<compile_context>
chip_gen: v5e
topology: v5e:2x2
jax: 0.10.0
libtpu: 0.0.40
codegen_flags: <defaults>
</compile_context>

<pallas_src>
import math

import jax
import jax.numpy as jnp
from jax.experimental import pallas as pl
from jax.experimental.pallas import tpu as pltpu

_VMEM_LIMIT_BYTES = 32 * 1024 * 1024           # safe on v5e/v6e (128 MiB) and v7x (64 MiB)
_NEG_INF = jnp.finfo(jnp.float32).min          # torch.finfo(dtype).min clamp value


# -----------------------------------------------------------------------------
# Tiled linear kernel:  y = x @ w.T   (nn.Linear(bias=False), w is (out, in))
# -----------------------------------------------------------------------------
def _matmul_kernel(x_ref, w_ref, o_ref, acc_ref):
    @pl.when(pl.program_id(2) == 0)
    def _():
        acc_ref[...] = jnp.zeros_like(acc_ref)

    # contract the K axis of x against the K axis of w -> no weight transpose needed
    acc_ref[...] += jax.lax.dot_general(
        x_ref[...], w_ref[...],
        dimension_numbers=(((1,), (1,)), ((), ())),
        preferred_element_type=jnp.float32)

    o_ref[...] = acc_ref[...].astype(o_ref.dtype)


def pallas_linear(x2d, w, *, block_m=256, block_n=256, block_k=256):
    """y = x2d @ w.T for an nn.Linear(bias=False) weight w of shape (out, in)."""
    M, K = x2d.shape
    N, K2 = w.shape
    assert K == K2
    bm, bn, bk = min(block_m, M), min(block_n, N), min(block_k, K)
    assert M % bm == 0 and N % bn == 0 and K % bk == 0
    grid = (M // bm, N // bn, K // bk)
    return pl.pallas_call(
        _matmul_kernel,
        out_shape=jax.ShapeDtypeStruct((M, N), x2d.dtype),
        grid_spec=pltpu.PrefetchScalarGridSpec(
            num_scalar_prefetch=0,
            grid=grid,
            in_specs=[
                pl.BlockSpec((bm, bk), lambda i, j, k: (i, k)),
                pl.BlockSpec((bn, bk), lambda i, j, k: (j, k)),
            ],
            out_specs=pl.BlockSpec((bm, bn), lambda i, j, k: (i, j)),
            scratch_shapes=[pltpu.VMEM((bm, bn), jnp.float32)],
        ),
        compiler_params=pltpu.CompilerParams(
            dimension_semantics=("parallel", "parallel", "arbitrary"),
            vmem_limit_bytes=_VMEM_LIMIT_BYTES),
    )(x2d, w)


# -----------------------------------------------------------------------------
# RoPE kernel: rotate the q and k sections of the fused (B, S, 3H) projection
# -----------------------------------------------------------------------------
def _rope_kernel(q_ref, k_ref, cos_ref, sin_ref, qo_ref, ko_ref):
    """Apply rotary embedding to every q / k head of a (1, ts, H) tile.

    sin_ref already carries the rotate_half sign (-1 on the first half of each
    head), so rope(x) = x * cos + roll(x, D/2) * sin.
    """
    head_dim = cos_ref.shape[-1]
    num_heads = q_ref.shape[-1] // head_dim
    half = head_dim // 2
    cos = cos_ref[0].astype(jnp.float32)                 # (ts, D), same for all heads
    sin = sin_ref[0].astype(jnp.float32)                 # (ts, D), sign-folded
    for src, dst in ((q_ref, qo_ref), (k_ref, ko_ref)):
        for h in range(num_heads):                       # static unroll over heads
            lo, hi = h * head_dim, (h + 1) * head_dim
            x = src[0, :, lo:hi].astype(jnp.float32)     # (ts, D)
            x_rot = pltpu.roll(x, shift=half, axis=1)    # [x2, x1]; sign lives in sin
            dst[0, :, lo:hi] = (x * cos + x_rot * sin).astype(dst.dtype)


def pallas_rope(qkv, cos_g, sin_g, num_heads, head_dim, *, block_s=256):
    """RoPE on the q and k column-sections of the fused (B, S, 3H) qkv tensor."""
    B, S, H3 = qkv.shape
    H = num_heads * head_dim
    assert H3 == 3 * H
    bs = min(block_s, S)
    assert S % bs == 0
    grid = (B, S // bs)
    q_in = pl.BlockSpec((1, bs, H), lambda b, si: (b, si, 0))   # columns [0, H)
    k_in = pl.BlockSpec((1, bs, H), lambda b, si: (b, si, 1))   # columns [H, 2H)
    cs_in = pl.BlockSpec((1, bs, head_dim), lambda b, si: (b, si, 0))
    out_spec = pl.BlockSpec((1, bs, H), lambda b, si: (b, si, 0))
    return pl.pallas_call(
        _rope_kernel,
        out_shape=(jax.ShapeDtypeStruct((B, S, H), qkv.dtype),
                   jax.ShapeDtypeStruct((B, S, H), qkv.dtype)),
        grid_spec=pltpu.PrefetchScalarGridSpec(
            num_scalar_prefetch=0,
            grid=grid,
            in_specs=[q_in, k_in, cs_in, cs_in],
            out_specs=[out_spec, out_spec],
        ),
        compiler_params=pltpu.CompilerParams(
            dimension_semantics=("parallel", "parallel"),
            vmem_limit_bytes=_VMEM_LIMIT_BYTES),
    )(qkv, qkv, cos_g, sin_g)


# -----------------------------------------------------------------------------
# Causal flash attention (online softmax, kv innermost, no S x S materialization)
# -----------------------------------------------------------------------------
def _flash_attn_kernel(q_ref, k_ref, v_ref, o_ref, m_sc, l_sc, acc_sc):
    qi = pl.program_id(2)
    ki = pl.program_id(3)
    block_q = q_ref.shape[1]
    block_k = k_ref.shape[1]
    head_dim = q_ref.shape[2]
    sm_scale = 1.0 / math.sqrt(head_dim)

    @pl.when(ki == 0)
    def _():
        m_sc[...] = jnp.full(m_sc.shape, -jnp.inf, jnp.float32)
        l_sc[...] = jnp.zeros_like(l_sc)
        acc_sc[...] = jnp.zeros_like(acc_sc)

    q = q_ref[0].astype(jnp.float32) * sm_scale          # (bq, D); scale folded into q
    k = k_ref[0].astype(jnp.float32)                     # (bk, D)
    v = v_ref[0].astype(jnp.float32)                     # (bk, D)

    # scores: contract D of q against D of k (no explicit k transpose)
    s = jax.lax.dot_general(q, k, (((1,), (1,)), ((), ())),
                            preferred_element_type=jnp.float32)   # (bq, bk)

    # causal additive mask built in-VMEM from global tile positions
    q_pos = qi * block_q + jax.lax.broadcasted_iota(jnp.int32, (block_q, block_k), 0)
    k_pos = ki * block_k + jax.lax.broadcasted_iota(jnp.int32, (block_q, block_k), 1)
    s = jnp.where(q_pos >= k_pos, s, _NEG_INF)

    # online softmax update
    m_prev = m_sc[...]
    m_new = jnp.maximum(m_prev, jnp.max(s, axis=-1, keepdims=True))
    alpha = jnp.exp(m_prev - m_new)
    p = jnp.exp(s - m_new)
    l_sc[...] = alpha * l_sc[...] + jnp.sum(p, axis=-1, keepdims=True)
    acc_sc[...] = alpha * acc_sc[...] + jnp.dot(p, v, preferred_element_type=jnp.float32)
    m_sc[...] = m_new

    @pl.when(ki == pl.num_programs(3) - 1)
    def _():
        o_ref[0] = (acc_sc[...] *
                    pl.reciprocal(l_sc[...], approx=True)).astype(o_ref.dtype)


def pallas_flash_attention(q_rot, k_rot, qkv, num_heads, head_dim,
                           *, block_q=128, block_k=128):
    """q_rot/k_rot: (B, S, H) roped q/k; qkv: fused (B, S, 3H) (v in the last H cols)."""
    B, S, H = q_rot.shape
    assert H == num_heads * head_dim
    bq, bk = min(block_q, S), min(block_k, S)
    assert S % bq == 0 and S % bk == 0
    grid = (B, num_heads, S // bq, S // bk)
    return pl.pallas_call(
        _flash_attn_kernel,
        out_shape=jax.ShapeDtypeStruct((B, S, H), q_rot.dtype),
        grid_spec=pltpu.PrefetchScalarGridSpec(
            num_scalar_prefetch=0,
            grid=grid,
            in_specs=[
                pl.BlockSpec((1, bq, head_dim), lambda b, h, qi, ki: (b, qi, h)),
                pl.BlockSpec((1, bk, head_dim), lambda b, h, qi, ki: (b, ki, h)),
                pl.BlockSpec((1, bk, head_dim),
                             lambda b, h, qi, ki: (b, ki, 2 * num_heads + h)),
            ],
            out_specs=pl.BlockSpec((1, bq, head_dim), lambda b, h, qi, ki: (b, qi, h)),
            scratch_shapes=[
                pltpu.VMEM((bq, 1), jnp.float32),          # running max
                pltpu.VMEM((bq, 1), jnp.float32),          # running denominator
                pltpu.VMEM((bq, head_dim), jnp.float32),   # output accumulator
            ],
        ),
        compiler_params=pltpu.CompilerParams(
            dimension_semantics=("parallel", "parallel", "parallel", "arbitrary"),
            vmem_limit_bytes=_VMEM_LIMIT_BYTES),
    )(q_rot, k_rot, qkv)


# -----------------------------------------------------------------------------
# Glue
# -----------------------------------------------------------------------------
def rotary_tables(head_dim, seq_len, base=10000.0):
    """LlamaRotaryEmbedding tables: cos, sin of shape (seq_len, head_dim)."""
    inv_freq = 1.0 / (base ** (jnp.arange(0, head_dim, 2, dtype=jnp.float32) / head_dim))
    t = jnp.arange(seq_len, dtype=jnp.float32)
    freqs = jnp.einsum("i,j->ij", t, inv_freq)          # (S, D/2)
    emb = jnp.concatenate([freqs, freqs], axis=-1)      # (S, D)
    return jnp.cos(emb), jnp.sin(emb)


def llama_attention_forward(hidden_states, position_ids, params, num_heads, head_dim,
                            *, rope_base=10000.0):
    """LlamaAttention.forward (standard causal path, no TP/SP, no kv cache).

    params["wqkv"]: (3H, H) = concat(q_proj.weight, k_proj.weight, v_proj.weight)
    params["wo"]:   (H, H)  = o_proj.weight
    Returns (attn_output, attn_weights=None, past_key_value=None).
    """
    B, S, H = hidden_states.shape
    assert H == num_heads * head_dim
    # TODO(synk): head_dim must be a multiple of 128 (true for Llama) so the per-head
    # column BlockSpecs are lane-aligned; smaller head dims need a padded layout.
    assert head_dim % 128 == 0

    x2d = hidden_states.reshape(B * S, H)
    # Fused q/k/v projection: single tiled matmul, hidden_states read from HBM once.
    qkv = pallas_linear(x2d, params["wqkv"]).reshape(B, S, 3 * H)

    # RoPE tables gathered with position_ids; rotate_half sign folded into sin so the
    # kernel only needs a lane roll (rotate_half(x) == roll(x, D/2) * sign).
    cos, sin = rotary_tables(head_dim, S, rope_base)
    half = head_dim // 2
    sign = jnp.concatenate([-jnp.ones((half,), jnp.float32),
                            jnp.ones((half,), jnp.float32)])
    cos_g = cos[position_ids]            # (B, S, D)
    sin_g = (sin * sign)[position_ids]   # (B, S, D)

    q_rot, k_rot = pallas_rope(qkv, cos_g, sin_g, num_heads, head_dim)

    # Causal flash attention straight in (B, S, H) layout: no HBM transposes,
    # no S x S scores, no attention-probability writeback.
    attn = pallas_flash_attention(q_rot, k_rot, qkv, num_heads, head_dim)

    out = pallas_linear(attn.reshape(B * S, H), params["wo"]).reshape(B, S, H)

    # TODO(synk): kv-cache (past_key_value), arbitrary (B,1,q,kv) additive masks and
    # output_attentions=True are not implemented; the kernel builds the standard
    # causal mask in-VMEM (output_attentions=False / use_cache=False path).
    return out, None, None


# -----------------------------------------------------------------------------
# Pure-JAX reference (mirrors the PyTorch module with the standard causal mask)
# -----------------------------------------------------------------------------
def reference_forward(hidden_states, position_ids, params, num_heads, head_dim):
    B, S, H = hidden_states.shape
    wqkv, wo = params["wqkv"], params["wo"]
    wq, wk, wv = wqkv[:H], wqkv[H:2 * H], wqkv[2 * H:]
    q = (hidden_states @ wq.T).reshape(B, S, num_heads, head_dim).transpose(0, 2, 1, 3)
    k = (hidden_states @ wk.T).reshape(B, S, num_heads, head_dim).transpose(0, 2, 1, 3)
    v = (hidden_states @ wv.T).reshape(B, S, num_heads, head_dim).transpose(0, 2, 1, 3)

    cos, sin = rotary_tables(head_dim, S)
    cos_g = cos[position_ids][:, None]   # (B,1,S,D)
    sin_g = sin[position_ids][:, None]

    def rot_half(x):
        h = x.shape[-1] // 2
        return jnp.concatenate([-x[..., h:], x[..., :h]], axis=-1)

    q = q * cos_g + rot_half(q) * sin_g
    k = k * cos_g + rot_half(k) * sin_g

    causal = jnp.tril(jnp.ones((S, S), dtype=bool))
    mask = jnp.where(causal, 0.0, jnp.finfo(jnp.float32).min)[None, None]
    scores = jnp.einsum("bhqd,bhkd->bhqk", q, k) / math.sqrt(head_dim) + mask
    scores = jnp.maximum(scores, jnp.finfo(jnp.float32).min)
    probs = jax.nn.softmax(scores.astype(jnp.float32), axis=-1)
    out = jnp.einsum("bhqk,bhkd->bhqd", probs.astype(v.dtype), v)
    out = out.transpose(0, 2, 1, 3).reshape(B, S, H)
    return out @ wo.T


# -----------------------------------------------------------------------------
if __name__ == "__main__":
    B, S, NH, D = 2, 256, 4, 128        # head_dim=128 like real Llama
    HID = NH * D                        # 512

    key = jax.random.PRNGKey(0)
    k_x, k_qkv, k_o = jax.random.split(key, 3)
    hidden = jax.random.normal(k_x, (B, S, HID), dtype=jnp.float32)
    params = {
        "wqkv": jax.random.normal(k_qkv, (3 * HID, HID), dtype=jnp.float32) * 0.05,
        "wo": jax.random.normal(k_o, (HID, HID), dtype=jnp.float32) * 0.05,
    }
    position_ids = jnp.broadcast_to(jnp.arange(S), (B, S))

    out, attn_w, past_kv = llama_attention_forward(hidden, position_ids, params, NH, D)
    out = jax.block_until_ready(out)

    ref_out = reference_forward(hidden, position_ids, params, NH, D)
    assert out.shape == (B, S, HID)
    assert attn_w is None and past_kv is None
    max_err = float(jnp.max(jnp.abs(out - ref_out)))
    assert jnp.allclose(out, ref_out, rtol=2e-2, atol=2e-2), f"max abs err {max_err}"

    print("KERNEL_OK")
</pallas_src>

<mosaic_0001>
module attributes {stable_mosaic.version = 11 : i64} {
  func.func @_matmul_kernel(%arg0: i32, %arg1: i32, %arg2: i32, %arg3: memref<256x256xf32, #tpu.memory_space<vmem>>, %arg4: memref<256x256xf32, #tpu.memory_space<vmem>>, %arg5: memref<256x256xf32, #tpu.memory_space<vmem>>, %arg6: memref<256x256xf32, #tpu.memory_space<vmem>>) attributes {dimension_semantics = [#tpu.dimension_semantics<parallel>, #tpu.dimension_semantics<parallel>, #tpu.dimension_semantics<arbitrary>], iteration_bounds = array<i64: 2, 6, 2>, scalar_prefetch = 0 : i64, scratch_operands = 1 : i64, tpu.core_type = #tpu.core_type<tc>, window_params = [{transform_indices = @transform_0, window_bounds = array<i64: 256, 256>}, {transform_indices = @transform_1, window_bounds = array<i64: 256, 256>}, {transform_indices = @transform_2, window_bounds = array<i64: 256, 256>}]} {
    %c0_i32 = arith.constant 0 : i32
    %0 = arith.cmpi eq, %arg2, %c0_i32 : i32
    %1 = arith.extui %0 : i1 to i32
    %c0_i32_0 = arith.constant 0 : i32
    %2 = arith.cmpi ne, %1, %c0_i32_0 : i32
    scf.if %2 {
      %cst_12 = arith.constant 0.000000e+00 : f32
      %11 = vector.broadcast %cst_12 : f32 to vector<256x256xf32>
      %c0_13 = arith.constant 0 : index
      %c0_14 = arith.constant 0 : index
      %12 = vector.load %arg6[%c0_13, %c0_14] : memref<256x256xf32, #tpu.memory_space<vmem>>, vector<256x256xf32>
      tpu.vector_store %arg6[%c0_13, %c0_14], %11 {strides = array<i32>} : memref<256x256xf32, #tpu.memory_space<vmem>>, vector<256x256xf32>,
    } else {
    }
    %c0 = arith.constant 0 : index
    %c0_1 = arith.constant 0 : index
    %3 = vector.load %arg6[%c0, %c0_1] : memref<256x256xf32, #tpu.memory_space<vmem>>, vector<256x256xf32>
    %c0_2 = arith.constant 0 : index
    %c0_3 = arith.constant 0 : index
    %4 = vector.load %arg3[%c0_2, %c0_3] : memref<256x256xf32, #tpu.memory_space<vmem>>, vector<256x256xf32>
    %c0_4 = arith.constant 0 : index
    %c0_5 = arith.constant 0 : index
    %5 = vector.load %arg4[%c0_4, %c0_5] : memref<256x256xf32, #tpu.memory_space<vmem>>, vector<256x256xf32>
    %cst = arith.constant dense<0.000000e+00> : vector<256x256xf32>
    %6 = tpu.matmul %4, %5, %cst {dimension_numbers = #tpu.dot_dimension_numbers<[1], [1], [0], [0], [0, 0, 1, 0], [], []>} : vector<256x256xf32>, vector<256x256xf32>, vector<256x256xf32> -> vector<256x256xf32>
    %7 = arith.addf %3, %6 : vector<256x256xf32>
    %c0_6 = arith.constant 0 : index
    %c0_7 = arith.constant 0 : index
    %8 = vector.load %arg6[%c0_6, %c0_7] : memref<256x256xf32, #tpu.memory_space<vmem>>, vector<256x256xf32>
    tpu.vector_store %arg6[%c0_6, %c0_7], %7 {strides = array<i32>} : memref<256x256xf32, #tpu.memory_space<vmem>>, vector<256x256xf32>,
    %c0_8 = arith.constant 0 : index
    %c0_9 = arith.constant 0 : index
    %9 = vector.load %arg6[%c0_8, %c0_9] : memref<256x256xf32, #tpu.memory_space<vmem>>, vector<256x256xf32>
    %c0_10 = arith.constant 0 : index
    %c0_11 = arith.constant 0 : index
    %10 = vector.load %arg5[%c0_10, %c0_11] : memref<256x256xf32, #tpu.memory_space<vmem>>, vector<256x256xf32>
    tpu.vector_store %arg5[%c0_10, %c0_11], %9 {strides = array<i32>} : memref<256x256xf32, #tpu.memory_space<vmem>>, vector<256x256xf32>,
    return
  }
  func.func @transform_0(%arg0: i32, %arg1: i32, %arg2: i32) -> (i32, i32) {
    %c0_i32 = arith.constant 0 : i32
    return %arg0, %arg2 : i32, i32
  }
  func.func @transform_1(%arg0: i32, %arg1: i32, %arg2: i32) -> (i32, i32) {
    %c0_i32 = arith.constant 0 : i32
    return %arg1, %arg2 : i32, i32
  }
  func.func @transform_2(%arg0: i32, %arg1: i32, %arg2: i32) -> (i32, i32) {
    %c0_i32 = arith.constant 0 : i32
    return %arg0, %arg1 : i32, i32
  }
}

</mosaic_0001>

<bundles_post_ra>
// kernel: tpu_custom_call.1
= control target key start
LH: loop header
LB: loop body
LE: loop exit
PB: predicated region body
PF: predicated region fallthrough
CT: control target
= control target key end

     0   :  { %s2354_s0 = inlined_call_operand.hbm [shape: f32[512,512], index: 0, kind: input, shape index: {}]   ;;  %s2355_s1 = inlined_call_operand.hbm [shape: f32[1536,512], index: 1, kind: input, shape index: {}]   ;;  %s2356_s2 = inlined_call_operand.hbm [shape: f32[512,1536], index: 2, kind: output, shape index: {}]  }
   0x1   :  { %2368 = sst [smem:[#allocation24_spill]] %s2354_s0 }
   0x2   :  { %2369 = sst [smem:[#allocation25_spill]] %s2356_s2 }
   0x3   :  { %7 = vsyncpa [#allocation4], 0 }
   0x4   :  { %9 = vsyncpa [#allocation4 + $0x1], 0 }
   0x5   :  { %10 = vsyncpa [#allocation7], 0 }
   0x6   :  { %12 = vsyncpa [#allocation7 + $0x1], 0 }
   0x7   :  { %13 = vsyncpa [#allocation5], 0 }
   0x8   :  { %15 = vsyncpa [#allocation5 + $0x1], 0  ;;  %s1785_s9 = smov 0   ;;  %s1787_s10 = smov 0  }
   0x9   :  { %s1789_s11 = smov 0   ;;  %s1791_s12 = smov 0  }
   0xa   :  { %s1793_s13 = smov 0   ;;  %s1795_s14 = smov 0  }
   0xb   :  { %s1797_s15 = smov 0   ;;  %s1799_s16 = smov 0  }
   0xc   :  { %s1801_s17 = smov 0   ;;  %s1803_s18 = smov 0  }
   0xd   :  { %s1805_s19 = smov 0   ;;  %s1807_s20 = smov 0  }
   0xe   :  { %s1809_s21 = smov 0   ;;  %s1811_s22 = smov 0  }
   0xf   :  { %s1813_s23 = smov 0   ;;  %s1815_s24 = smov 0  }
  0x10 LB: > { %2370 = sst [smem:[#allocation12_spill]] %s1721_s14  ;;  %s1352_s25 = sadd.s32 4294967295, %s1761_s24   ;;  %s1761_s24 = sphi %s1815_s24, %s21_s24   ;;  %s1757_s23 = sphi %s1813_s23, %s2426_s23   ;;  %s1753_s22 = sphi %s1811_s22, %s2425_s22   ;;  %s1749_s21 = sphi %s1809_s21, %s2424_s21   ;;  %s1745_s20 = sphi %s1807_s20, %s2410_s20   ;;  %s1741_s19 = sphi %s1805_s19, %s2423_s19   ;;  %s1737_s18 = sphi %s1803_s18, %s2422_s18   ;;  %s1733_s17 = sphi %s1801_s17, %s2409_s17   ;;  %s1729_s16 = sphi %s1799_s16, %s2421_s16   ;;  %s1725_s15 = sphi %s1797_s15, %s2420_s15   ;;  %s1721_s14 = sphi %s1795_s14, %s2407_s14   ;;  %s1717_s13 = sphi %s1793_s13, %s2419_s13   ;;  %s1713_s12 = sphi %s1791_s12, %s2418_s12   ;;  %s1709_s11 = sphi %s1789_s11, %s2417_s11   ;;  %s1705_s10 = sphi %s1787_s10, %s2416_s10   ;;  %s1701_s9 = sphi %s1785_s9, %s2414_s9  }
  0x11   : > { %2371 = sst [smem:[#allocation13_spill]] %s1733_s17  ;;  %s33_s26 = sadd.s32 1, %s1749_s21 }
  0x12   : > { %2372 = sst [smem:[#allocation14_spill]] %s1737_s18  ;;  %p1865_p0 = scmp.ge.s32.totalorder %s33_s26, 2 }
  0x13   : > { %2373 = sst [smem:[#allocation15_spill]] %s1741_s19  ;;  %p56_p1 = scmp.ne.s32.totalorder %s1733_s17, %s1729_s16 }
  0x14   : > { %2374 = sst [smem:[#allocation16_spill]] %s1745_s20  ;;  %s2428_s26 = smov (%p1865_p0, %s33_s26), 0 }
  0x15   : > { %2375 = sst [smem:[#allocation17_spill]] %s1757_s23  ;;  %p57_p2 = scmp.eq.s32.totalorder %s1761_s24, 0 }
  0x16   : > { %2377 = sst [smem:[#allocation18_spill]] %s2428_s26  ;;  %p62_p3 = scmp.ne.s32.totalorder %s1729_s16, %s1725_s15 }
  0x17   : > { %s1881_s30 = ssub.s32 %s1749_s21, %s2428_s26  ;;  %p1883_p4 = scmp.eq.s32.totalorder %s1352_s25, 0 }
  0x18   : > { %p1889_p5 = por %p57_p2, %p56_p1  ;;  %p1893_p6 = scmp.eq.s32.totalorder %s1352_s25, 23 }
  0x19   : > { %p1899_p7 = por %p1883_p4, %p62_p3  ;;  %p1398_p8 = scmp.lt.s32.totalorder %s1761_s24, 24 }
  0x1a   : > { %s142_s7 = sand.u32 1, %s1733_s17   ;;  %s2362_s15 = sshll.u32 %s1749_s21, 1 }
  0x1b   : > { %s1356_s8 = sshll.u32 %s142_s7, 9  ;;  %s1378_s29 = sshll.u32 %s1757_s23, 7 }
  0x1c   : > { %s146_s28 = scalar_lea.vmem [#allocation3], %s1356_s8  ;;  %s152_s25 = sadd.s32 %s1378_s29, %s2362_s15 }
  0x1d   : > { %s157_s26 = sshll.u32 %s146_s28, 4  ;;  %s1360_s2 = sshll.u32 %s152_s25, 3  ;;  %s158_s26 = int_to_ptr.vmem [resolvable:$true] %s157_s26 }
  0x1e   : > { %p1388_p9 = pnand %p1398_p8, %p1889_p5  ;;  %s2382_s0 = sld [smem:[#allocation24_spill]] }
  0x1f   : > { %p1366_p10 = scmp.ge.s32.totalorder %s1761_s24, 1  ;;  %s143_s28 = scalar_lea.sflag [#allocation4], %s142_s7 }
  0x20   : > { %s2359_s29 = smov 512   ;;  %s2360_s4 = smov 256  }
  0x21   : > { %s2361_s25 = smov 16   ;;  %p190_p11 = scmp.lt.s32.totalorder %s1761_s24, 25 }
  0x22   : > { %s36_s19 = sadd.s32 1, %s1753_s22  ;;  %s77_s20 = sadd.s32 1, %s1721_s14 }
  0x23   : > { %p1921_p12 = pnand %p1366_p10, %p190_p11  ;;  %s2430_s19 = smov (!%p1865_p0, %s36_s19), %s1753_s22 }
  0x24   : > { %s154_s18 = scalar_lea.hbm %s2382_s0, %s1360_s2  ;;  %p84_p13 = scmp.ne.s32.totalorder %s1721_s14, %s1717_s13 }
  0x25   : > { %s155_s8 = sshll.u32 %s154_s18, 4  ;;  %s1353_s18 = sadd.s32 4294967294, %s1761_s24   ;;  %s156_s8 = int_to_ptr.hbm [resolvable:$true] %s155_s8 }
  0x26   : > { %1390 = dma.hbm_to_vmem [thread:$0]  (!%p1388_p9), %s156_s8, 8192, %s158_s26, %s143_s28, %s2359_s29, %s2360_s4, %s2361_s25  }
  0x27   : > { %p38_p1 = scmp.ge.s32.totalorder %s2430_s19, 6  ;;  %p90_p3 = scmp.ne.s32.totalorder %s1717_s13, %s1713_s12 }
  0x28   : > { %p1937_p5 = por %p84_p13, %p57_p2  ;;  %s105_s7 = sadd.s32 1, %s1709_s11 }
  0x29   : > { %s2432_s19 = smov (%p38_p1, %s2430_s19), 0  ;;  %s2386_s8 = sadd.s32 1, %s1757_s23 }
  0x2a   : > { %2385 = sst [smem:[#allocation19_spill]] %s2432_s19  ;;  %s2434_s8 = smov (!%p38_p1, %s2386_s8), %s1757_s23 }
  0x2b   : > { %s72_s27 = ssub.s32 %s1753_s22, %s2432_s19  ;;  %p1951_p0 = por %p90_p3, %p1883_p4 }
  0x2c   : > { %p42_p2 = scmp.ge.s32.totalorder %s2434_s8, 2  ;;  %s74_s12 = sor.u32 %s72_s27, %s1881_s30 }
  0x2d   : > { %p75_p9 = scmp.eq.s32.totalorder %s74_s12, 0  ;;  %p115_p10 = scmp.ne.s32.totalorder %s1709_s11, %s1705_s10 }
  0x2e   : > { %s2436_s8 = smov (%p42_p2, %s2434_s8), 0  ;;  %p121_p1 = scmp.ne.s32.totalorder %s1705_s10, %s1701_s9 }
  0x2f   : > { %2388 = sst [smem:[#allocation20_spill]] %s2436_s8  ;;  %s44_s3 = ssub.s32 %s1757_s23, %s2436_s8 }
  0x30   : > { %s1961_s29 = scalar_select %p75_p9, %s1721_s14, %s77_s20  }
  0x31   : > { %p1967_p11 = por %p1893_p6, %p115_p10  ;;  %s46_s25 = sor.u32 %s1881_s30, %s44_s3 }
  0x32   : > { %2389 = sst [smem:[#allocation21_spill]] %s1961_s29  ;;  %s102_s15 = sor.u32 %s72_s27, %s44_s3 }
  0x33   : > { %p47_p4 = scmp.eq.s32.totalorder %s46_s25, 0  ;;  %p103_p13 = scmp.eq.s32.totalorder %s102_s15, 0 }
  0x34   : > { %p122_p3 = scmp.eq.s32.totalorder %s1353_s18, 23  ;;  %s2391_s12 = sadd.s32 1, %s1733_s17 }
  0x35   : > { %s1977_s0 = scalar_select %p47_p4, %s1733_s17, %s2391_s12  }
  0x36   : > { %s1980_s19 = scalar_select %p103_p13, %s1709_s11, %s105_s7  }
  0x37   : > { %2392 = sst [smem:[#allocation22_spill]] %s1977_s0  ;;  %p1982_p2 = por %p122_p3, %p121_p1 }
  0x38   : > { %2393 = sst [smem:[#allocation23_spill]] %s1980_s19  ;;  %s167_s5 = sand.u32 1, %s1721_s14  }
  0x39   : > { %s1361_s8 = sshll.u32 %s167_s5, 9  ;;  %s1379_s23 = sshll.u32 %s1753_s22, 7 }
  0x3a   : > { %s2395_s30 = sshll.u32 %s1749_s21, 1  ;;  %s171_s25 = scalar_lea.vmem [#allocation6], %s1361_s8 }
  0x3b   : > { %s177_s27 = sadd.s32 %s1379_s23, %s2395_s30  ;;  %s182_s3 = sshll.u32 %s171_s25, 4  ;;  %s183_s3 = int_to_ptr.vmem [resolvable:$true] %s182_s3 }
  0x3c   : > { %s1365_s29 = sshll.u32 %s177_s27, 3  ;;  %p1391_p6 = pnand %p1398_p8, %p1937_p5 }
  0x3d   : > { %s179_s12 = scalar_lea.hbm %s2355_s1, %s1365_s29  ;;  %s168_s0 = scalar_lea.sflag [#allocation7], %s167_s5 }
  0x3e   : > { %s180_s7 = sshll.u32 %s179_s12, 4  ;;  %s2396_s17 = smov 16   ;;  %s181_s7 = int_to_ptr.hbm [resolvable:$true] %s180_s7 }
  0x3f   : > { %s2397_s14 = smov 256   ;;  %s2398_s19 = smov 512  }
  0x40   : > { %1393 = dma.hbm_to_vmem [thread:$0]  (!%p1391_p6), %s181_s7, 8192, %s183_s3, %s168_s0, %s2398_s19, %s2397_s14, %s2396_s17  }
  0x41   : > { %194 = sbr.rel (%p1921_p12) target bundleno = 607 (0x25f), region = 28  ;;  %s196_s23 = sand.u32 (!%p1921_p12), 1, %s1729_s16  }
  0x42   : > { %s1367_s8 = sshll.u32 (!%p1921_p12), %s196_s23, 9  ;;  %s197_s30 = scalar_lea.sflag (!%p1921_p12), [#allocation4], %s196_s23 }
  0x43   : > { %s2003_s27 = scalar_lea.vmem (!%p1921_p12), [#allocation3], %s1367_s8 }
  0x46   : > { %1688 = dma.done.wait (%p1899_p7), %s197_s30, 8192  }
  0x47   : > { %1690 = vsyncadd (%p1899_p7), %s197_s30, 4294959104  ;;  %s206_s29 = sand.u32 1, %s1717_s13  }
  0x48   : > { %s1368_s26 = sshll.u32 %s206_s29, 9  ;;  %s207_s0 = scalar_lea.sflag [#allocation7], %s206_s29 }
  0x49   : > { %s2010_s14 = scalar_lea.vmem [#allocation6], %s1368_s26 }
  0x4a   : > { %1692 = dma.done.wait (%p1951_p0), %s207_s0, 8192  }
  0x4b   : > { %1694 = vsyncadd (%p1951_p0), %s207_s0, 4294959104  ;;  %s234_s17 = sand.u32 1, %s1705_s10   ;;  %s2399_s6 = sld [smem:[#allocation14_spill]] }
  0x4c   : > { %s1369_s2 = sshll.u32 %s234_s17, 9 }
  0x4d   : > { %s2019_s19 = scalar_lea.vmem [#allocation8], %s1369_s2 }
  0x51   : > { %p1370_p7 = scmp.ne.s32.totalorder %s2399_s6, 0 }
  0x53   : > { %246 = sbr.rel (%p1370_p7) target bundleno = 153 (0x99), region = 40 }
  0x58   : > { %v1766_v0 = vmov 0.0  }
  0x59   : > { %247 = vst [vmem:[#allocation2 + $0xb0] sm:$0xff] %v1766_v0 }
  0x5a   : > { %248 = vst [vmem:[#allocation2 + $0x1b0] sm:$0xff] %v1766_v0 }
  0x5b   : > { %249 = vst [vmem:[#allocation2 + $0xd8] sm:$0xff] %v1766_v0 }
  0x5c   : > { %250 = vst [vmem:[#allocation2 + $0x18] sm:$0xff] %v1766_v0 }
  0x5d   : > { %251 = vst [vmem:[#allocation2 + $0x50] sm:$0xff] %v1766_v0 }
  0x5e   : > { %252 = vst [vmem:[#allocation2 + $0x168] sm:$0xff] %v1766_v0 }
  0x5f   : > { %253 = vst [vmem:[#allocation2 + $0x130] sm:$0xff] %v1766_v0 }
  0x60   : > { %254 = vst [vmem:[#allocation2 + $0x48] sm:$0xff] %v1766_v0 }
  0x61   : > { %255 = vst [vmem:[#allocation2 + $0x180] sm:$0xff] %v1766_v0 }
  0x62   : > { %256 = vst [vmem:[#allocation2 + $0x110] sm:$0xff] %v1766_v0 }
  0x63   : > { %257 = vst [vmem:[#allocation2 + $0x118] sm:$0xff] %v1766_v0 }
  0x64   : > { %258 = vst [vmem:[#allocation2 + $0x98] sm:$0xff] %v1766_v0 }
  0x65   : > { %259 = vst [vmem:[#allocation2 + $0x120] sm:$0xff] %v1766_v0 }
  0x66   : > { %260 = vst [vmem:[#allocation2 + $0x150] sm:$0xff] %v1766_v0 }
  0x67   : > { %261 = vst [vmem:[#allocation2 + $0x108] sm:$0xff] %v1766_v0 }
  0x68   : > { %262 = vst [vmem:[#allocation2 + $0x60] sm:$0xff] %v1766_v0 }
  0x69   : > { %263 = vst [vmem:[#allocation2 + $0xe0] sm:$0xff] %v1766_v0 }
  0x6a   : > { %264 = vst [vmem:[#allocation2 + $0x188] sm:$0xff] %v1766_v0 }
  0x6b   : > { %265 = vst [vmem:[#allocation2 + $0x138] sm:$0xff] %v1766_v0 }
  0x6c   : > { %266 = vst [vmem:[#allocation2 + $0x140] sm:$0xff] %v1766_v0 }
  0x6d   : > { %267 = vst [vmem:[#allocation2 + $0x80] sm:$0xff] %v1766_v0 }
  0x6e   : > { %268 = vst [vmem:[#allocation2 + $0x1a8] sm:$0xff] %v1766_v0 }
  0x6f   : > { %269 = vst [vmem:[#allocation2 + $0x1b8] sm:$0xff] %v1766_v0 }
  0x70   : > { %270 = vst [vmem:[#allocation2 + $0x28] sm:$0xff] %v1766_v0 }
  0x71   : > { %271 = vst [vmem:[#allocation2 + $0x1e8] sm:$0xff] %v1766_v0 }
  0x72   : > { %272 = vst [vmem:[#allocation2 + $0xf8] sm:$0xff] %v1766_v0 }
  0x73   : > { %273 = vst [vmem:[#allocation2 + $0x160] sm:$0xff] %v1766_v0 }
  0x74   : > { %274 = vst [vmem:[#allocation2 + $0x30] sm:$0xff] %v1766_v0 }
  0x75   : > { %275 = vst [vmem:[#allocation2 + $0x1e0] sm:$0xff] %v1766_v0 }
  0x76   : > { %276 = vst [vmem:[#allocation2] sm:$0xff] %v1766_v0 }
  0x77   : > { %277 = vst [vmem:[#allocation2 + $0xf0] sm:$0xff] %v1766_v0 }
  0x78   : > { %278 = vst [vmem:[#allocation2 + $0x8] sm:$0xff] %v1766_v0 }
  0x79   : > { %279 = vst [vmem:[#allocation2 + $0x148] sm:$0xff] %v1766_v0 }
  0x7a   : > { %280 = vst [vmem:[#allocation2 + $0x1d0] sm:$0xff] %v1766_v0 }
  0x7b   : > { %281 = vst [vmem:[#allocation2 + $0x100] sm:$0xff] %v1766_v0 }
  0x7c   : > { %282 = vst [vmem:[#allocation2 + $0xc8] sm:$0xff] %v1766_v0 }
  0x7d   : > { %283 = vst [vmem:[#allocation2 + $0x40] sm:$0xff] %v1766_v0 }
  0x7e   : > { %284 = vst [vmem:[#allocation2 + $0x1f8] sm:$0xff] %v1766_v0 }
  0x7f   : > { %285 = vst [vmem:[#allocation2 + $0x20] sm:$0xff] %v1766_v0 }
  0x80   : > { %286 = vst [vmem:[#allocation2 + $0x128] sm:$0xff] %v1766_v0 }
  0x81   : > { %287 = vst [vmem:[#allocation2 + $0x1a0] sm:$0xff] %v1766_v0 }
  0x82   : > { %288 = vst [vmem:[#allocation2 + $0x1f0] sm:$0xff] %v1766_v0 }
  0x83   : > { %289 = vst [vmem:[#allocation2 + $0xe8] sm:$0xff] %v1766_v0 }
  0x84   : > { %290 = vst [vmem:[#allocation2 + $0x78] sm:$0xff] %v1766_v0 }
  0x85   : > { %291 = vst [vmem:[#allocation2 + $0x70] sm:$0xff] %v1766_v0 }
  0x86   : > { %292 = vst [vmem:[#allocation2 + $0x90] sm:$0xff] %v1766_v0 }
  0x87   : > { %293 = vst [vmem:[#allocation2 + $0x1d8] sm:$0xff] %v1766_v0 }
  0x88   : > { %294 = vst [vmem:[#allocation2 + $0xd0] sm:$0xff] %v1766_v0 }
  0x89   : > { %295 = vst [vmem:[#allocation2 + $0xb8] sm:$0xff] %v1766_v0 }
  0x8a   : > { %296 = vst [vmem:[#allocation2 + $0x88] sm:$0xff] %v1766_v0 }
  0x8b   : > { %297 = vst [vmem:[#allocation2 + $0xa8] sm:$0xff] %v1766_v0 }
  0x8c   : > { %298 = vst [vmem:[#allocation2 + $0x1c8] sm:$0xff] %v1766_v0 }
  0x8d   : > { %299 = vst [vmem:[#allocation2 + $0x170] sm:$0xff] %v1766_v0 }
  0x8e   : > { %300 = vst [vmem:[#allocation2 + $0x178] sm:$0xff] %v1766_v0 }
  0x8f   : > { %301 = vst [vmem:[#allocation2 + $0x68] sm:$0xff] %v1766_v0 }
  0x90   : > { %302 = vst [vmem:[#allocation2 + $0x190] sm:$0xff] %v1766_v0 }
  0x91   : > { %303 = vst [vmem:[#allocation2 + $0x198] sm:$0xff] %v1766_v0 }
  0x92   : > { %304 = vst [vmem:[#allocation2 + $0x38] sm:$0xff] %v1766_v0 }
  0x93   : > { %305 = vst [vmem:[#allocation2 + $0xc0] sm:$0xff] %v1766_v0 }
  0x94   : > { %306 = vst [vmem:[#allocation2 + $0x1c0] sm:$0xff] %v1766_v0 }
  0x95   : > { %307 = vst [vmem:[#allocation2 + $0x158] sm:$0xff] %v1766_v0 }
  0x96   : > { %308 = vst [vmem:[#allocation2 + $0x10] sm:$0xff] %v1766_v0 }
  0x97   : > { %309 = vst [vmem:[#allocation2 + $0x58] sm:$0xff] %v1766_v0 }
  0x98   : > { %310 = vst [vmem:[#allocation2 + $0xa0] sm:$0xff] %v1766_v0 }
  0x99 PF: > { %v501_v1 = vld [vmem:[%s2010_s14 + $0x1f0] sm:$0xff]  ;;  %v502_v2 = vld [vmem:[%s2010_s14 + $0x1f8] sm:$0xff]  ;;  %v499_v5 = vld [vmem:[%s2010_s14 + $0x1e0] sm:$0xff]  ;;  %s2400_s28 = sld [smem:[#allocation16_spill]]  ;;  %s1212_s26 = scalar_lea.sflag [#allocation5], %s234_s17 }
  0x9a   : > { %729 = vmatpush.xpose.msra.mxu2 %v501_v1  ;;  %842 = vmatpush.xpose.msra.mxu3 %v502_v2  ;;  %v469_v3 = vld [vmem:[%s2010_s14 + $0xf0] sm:$0xff]  ;;  %v470_v4 = vld [vmem:[%s2010_s14 + $0xf8] sm:$0xff]  ;;  %v500_v6 = vld [vmem:[%s2010_s14 + $0x1e8] sm:$0xff]  ;;  %s2401_s5 = sld [smem:[#allocation15_spill]] }
  0x9b   : > { %503 = vmatpush.xpose.msra.mxu0 %v469_v3  ;;  %616 = vmatpush.xpose.msra.mxu1 %v470_v4  ;;  %v467_v7 = vld [vmem:[%s2010_s14 + $0xe0] sm:$0xff]  ;;  %v468_v8 = vld [vmem:[%s2010_s14 + $0xe8] sm:$0xff]  ;;  %v497_v9 = vld [vmem:[%s2010_s14 + $0x1d0] sm:$0xff]  ;;  %s2402_s23 = sld [smem:[#allocation25_spill]] }
  0x9c   : > { %v498_v10 = vld [vmem:[%s2010_s14 + $0x1d8] sm:$0xff]  ;;  %v465_v11 = vld [vmem:[%s2010_s14 + $0xd0] sm:$0xff]  ;;  %v495_v13 = vld [vmem:[%s2010_s14 + $0x1c0] sm:$0xff] }
  0x9d   : > { %v466_v12 = vld [vmem:[%s2010_s14 + $0xd8] sm:$0xff]  ;;  %v496_v14 = vld [vmem:[%s2010_s14 + $0x1c8] sm:$0xff]  ;;  %v463_v15 = vld [vmem:[%s2010_s14 + $0xc0] sm:$0xff] }
  0x9e   : > { %730 = vmatpush.xpose.msra.mxu2 %v499_v5  ;;  %843 = vmatpush.xpose.msra.mxu3 %v500_v6  ;;  %v464_v16 = vld [vmem:[%s2010_s14 + $0xc8] sm:$0xff]  ;;  %v493_v17 = vld [vmem:[%s2010_s14 + $0x1b0] sm:$0xff]  ;;  %v494_v18 = vld [vmem:[%s2010_s14 + $0x1b8] sm:$0xff] }
  0x9f   : > { %504 = vmatpush.xpose.msra.mxu0 %v467_v7  ;;  %617 = vmatpush.xpose.msra.mxu1 %v468_v8  ;;  %v461_v19 = vld [vmem:[%s2010_s14 + $0xb0] sm:$0xff]  ;;  %v462_v20 = vld [vmem:[%s2010_s14 + $0xb8] sm:$0xff]  ;;  %v491_v21 = vld [vmem:[%s2010_s14 + $0x1a0] sm:$0xff]  ;;  %s1380_s25 = smul.u32 384, %s2400_s28 }
  0xa0   : > { %v492_v22 = vld [vmem:[%s2010_s14 + $0x1a8] sm:$0xff]  ;;  %v459_v23 = vld [vmem:[%s2010_s14 + $0xa0] sm:$0xff]  ;;  %v489_v25 = vld [vmem:[%s2010_s14 + $0x190] sm:$0xff]  ;;  %s1373_s3 = sshll.u32 %s2401_s5, 1 }
  0xa1   : > { %v460_v24 = vld [vmem:[%s2010_s14 + $0xa8] sm:$0xff]  ;;  %v490_v26 = vld [vmem:[%s2010_s14 + $0x198] sm:$0xff]  ;;  %v457_v27 = vld [vmem:[%s2010_s14 + $0x90] sm:$0xff]  ;;  %s1224_s15 = sadd.s32 %s1380_s25, %s1373_s3  ;;  %s2403_s8 = smov %s2402_s23 }
  0xa2   : > { %731 = vmatpush.xpose.msra.mxu2 %v497_v9  ;;  %844 = vmatpush.xpose.msra.mxu3 %v498_v10  ;;  %v458_v28 = vld [vmem:[%s2010_s14 + $0x98] sm:$0xff]  ;;  %v487_v29 = vld [vmem:[%s2010_s14 + $0x180] sm:$0xff]  ;;  %v488_v30 = vld [vmem:[%s2010_s14 + $0x188] sm:$0xff]  ;;  %s1375_s18 = sshll.u32 %s1224_s15, 3  ;;  %s1615_s28 = scalar_lea.hbm %s2403_s8, 6144 }
  0xa3   : > { %505 = vmatpush.xpose.msra.mxu0 %v465_v11  ;;  %618 = vmatpush.xpose.msra.mxu1 %v466_v12  ;;  %v455_v31 = vld [vmem:[%s2010_s14 + $0x80] sm:$0xff]  ;;  %v456_v32 = vld [vmem:[%s2010_s14 + $0x88] sm:$0xff]  ;;  %v485_v33 = vld [vmem:[%s2010_s14 + $0x170] sm:$0xff]  ;;  %s1226_s30 = scalar_lea.hbm %s2402_s23, %s1375_s18 }
  0xa4   : > { %v486_v34 = vld [vmem:[%s2010_s14 + $0x178] sm:$0xff]  ;;  %v453_v35 = vld [vmem:[%s2010_s14 + $0x70] sm:$0xff]  ;;  %v483_v37 = vld [vmem:[%s2010_s14 + $0x160] sm:$0xff]  ;;  %s1229_s29 = sshll.u32 %s1226_s30, 4  ;;  %s1230_s29 = int_to_ptr.hbm [resolvable:$true] %s1229_s29 }
  0xa5   : > { %v454_v36 = vld [vmem:[%s2010_s14 + $0x78] sm:$0xff]  ;;  %v484_v38 = vld [vmem:[%s2010_s14 + $0x168] sm:$0xff]  ;;  %v451_v39 = vld [vmem:[%s2010_s14 + $0x60] sm:$0xff]  ;;  %s1609_s0 = sshra.s32 %s1230_s29, 4  ;;  %s1610_s0 = int_to_ptr.hbm [resolvable:$true] %s1609_s0 }
  0xa6   : > { %732 = vmatpush.xpose.msra.mxu2 %v495_v13  ;;  %845 = vmatpush.xpose.msra.mxu3 %v496_v14  ;;  %v452_v40 = vld [vmem:[%s2010_s14 + $0x68] sm:$0xff]  ;;  %v481_v41 = vld [vmem:[%s2010_s14 + $0x150] sm:$0xff]  ;;  %v482_v42 = vld [vmem:[%s2010_s14 + $0x158] sm:$0xff]  ;;  %p1616_p0 = scmp.lt.s32.totalorder %s1610_s0, %s2403_s8 }
  0xa7   : > { %506 = vmatpush.xpose.msra.mxu0 %v463_v15  ;;  %619 = vmatpush.xpose.msra.mxu1 %v464_v16  ;;  %v449_v43 = vld [vmem:[%s2010_s14 + $0x50] sm:$0xff]  ;;  %v450_v44 = vld [vmem:[%s2010_s14 + $0x58] sm:$0xff]  ;;  %v479_v45 = vld [vmem:[%s2010_s14 + $0x140] sm:$0xff] }
  0xa8   : > { %v480_v46 = vld [vmem:[%s2010_s14 + $0x148] sm:$0xff]  ;;  %v447_v47 = vld [vmem:[%s2010_s14 + $0x40] sm:$0xff]  ;;  %v477_v49 = vld [vmem:[%s2010_s14 + $0x130] sm:$0xff] }
  0xa9   : > { %v448_v48 = vld [vmem:[%s2010_s14 + $0x48] sm:$0xff]  ;;  %v478_v50 = vld [vmem:[%s2010_s14 + $0x138] sm:$0xff]  ;;  %v445_v51 = vld [vmem:[%s2010_s14 + $0x30] sm:$0xff] }
  0xaa   : > { %733 = vmatpush.xpose.msra.mxu2 %v493_v17  ;;  %846 = vmatpush.xpose.msra.mxu3 %v494_v18  ;;  %v446_v52 = vld [vmem:[%s2010_s14 + $0x38] sm:$0xff]  ;;  %v475_v53 = vld [vmem:[%s2010_s14 + $0x120] sm:$0xff]  ;;  %v476_v54 = vld [vmem:[%s2010_s14 + $0x128] sm:$0xff] }
  0xab   : > { %507 = vmatpush.xpose.msra.mxu0 %v461_v19  ;;  %620 = vmatpush.xpose.msra.mxu1 %v462_v20  ;;  %v443_v55 = vld [vmem:[%s2010_s14 + $0x20] sm:$0xff]  ;;  %v444_v56 = vld [vmem:[%s2010_s14 + $0x28] sm:$0xff]  ;;  %v473_v57 = vld [vmem:[%s2010_s14 + $0x110] sm:$0xff] }
  0xac   : > { %v474_v58 = vld [vmem:[%s2010_s14 + $0x118] sm:$0xff]  ;;  %v441_v59 = vld [vmem:[%s2010_s14 + $0x10] sm:$0xff]  ;;  %v471_v61 = vld [vmem:[%s2010_s14 + $0x100] sm:$0xff] }
  0xad   : > { %v442_v60 = vld [vmem:[%s2010_s14 + $0x18] sm:$0xff]  ;;  %v472_v62 = vld [vmem:[%s2010_s14 + $0x108] sm:$0xff]  ;;  %v439_v63 = vld [vmem:[%s2010_s14] sm:$0xff] }
  0xae   : > { %734 = vmatpush.xpose.msra.mxu2 %v491_v21  ;;  %847 = vmatpush.xpose.msra.mxu3 %v492_v22  ;;  %v440_v0 = vld [vmem:[%s2010_s14 + $0x8] sm:$0xff]  ;;  %v375_v1 = vld [vmem:[%s2003_s27] sm:$0xff]  ;;  %v377_v3 = vld [vmem:[%s2003_s27 + $0x10] sm:$0xff]  ;;  %s1611_s14 = scalar_lea.hbm %s1610_s0, 512 }
  0xaf   : > { %508 = vmatpush.xpose.msra.mxu0 %v459_v23  ;;  %621 = vmatpush.xpose.msra.mxu1 %v460_v24  ;;  %v376_v2 = vld [vmem:[%s2003_s27 + $0x8] sm:$0xff]  ;;  %v378_v4 = vld [vmem:[%s2003_s27 + $0x18] sm:$0xff]  ;;  %v379_v5 = vld [vmem:[%s2003_s27 + $0x20] sm:$0xff]  ;;  %p1612_p8 = scmp.ne.s32.totalorder %s1610_s0, %s1611_s14  ;;  %p1617_p9 = scmp.lt.s32.totalorder %s1615_s28, %s1611_s14 }
  0xb0   : > { %v380_v6 = vld [vmem:[%s2003_s27 + $0x28] sm:$0xff]  ;;  %v381_v7 = vld [vmem:[%s2003_s27 + $0x30] sm:$0xff]  ;;  %v382_v8 = vld [vmem:[%s2003_s27 + $0x38] sm:$0xff] }
  0xb1   : > { %v383_v9 = vld [vmem:[%s2003_s27 + $0x40] sm:$0xff]  ;;  %v384_v10 = vld [vmem:[%s2003_s27 + $0x48] sm:$0xff]  ;;  %v385_v11 = vld [vmem:[%s2003_s27 + $0x50] sm:$0xff]  ;;  %p1613_p12 = pnand %p1612_p8, %p1967_p11  ;;  %p1618_p10 = por %p1617_p9, %p1616_p0 }
  0xb2   : > { %735 = vmatpush.xpose.msra.mxu2 %v489_v25  ;;  %848 = vmatpush.xpose.msra.mxu3 %v490_v26  ;;  %v386_v12 = vld [vmem:[%s2003_s27 + $0x58] sm:$0xff]  ;;  %v387_v13 = vld [vmem:[%s2003_s27 + $0x60] sm:$0xff]  ;;  %v388_v14 = vld [vmem:[%s2003_s27 + $0x68] sm:$0xff] }
  0xb3   : > { %509 = vmatpush.xpose.msra.mxu0 %v457_v27  ;;  %622 = vmatpush.xpose.msra.mxu1 %v458_v28  ;;  %v389_v15 = vld [vmem:[%s2003_s27 + $0x70] sm:$0xff]  ;;  %v390_v16 = vld [vmem:[%s2003_s27 + $0x78] sm:$0xff]  ;;  %v391_v17 = vld [vmem:[%s2003_s27 + $0x80] sm:$0xff]  ;;  %p1614_p5 = pneg %p1613_p12 }
  0xb4   : > { %v392_v18 = vld [vmem:[%s2003_s27 + $0x88] sm:$0xff]  ;;  %v393_v19 = vld [vmem:[%s2003_s27 + $0x90] sm:$0xff]  ;;  %v394_v20 = vld [vmem:[%s2003_s27 + $0x98] sm:$0xff] }
  0xb5   : > { %v395_v21 = vld [vmem:[%s2003_s27 + $0xa0] sm:$0xff]  ;;  %v396_v22 = vld [vmem:[%s2003_s27 + $0xa8] sm:$0xff]  ;;  %v397_v23 = vld [vmem:[%s2003_s27 + $0xb0] sm:$0xff]  ;;  %p1619_p4 = pnand %p1618_p10, %p1614_p5 }
  0xb6   : > { %736 = vmatpush.xpose.msra.mxu2 %v487_v29  ;;  %849 = vmatpush.xpose.msra.mxu3 %v488_v30  ;;  %v398_v24 = vld [vmem:[%s2003_s27 + $0xb8] sm:$0xff]  ;;  %v399_v25 = vld [vmem:[%s2003_s27 + $0xc0] sm:$0xff]  ;;  %v400_v26 = vld [vmem:[%s2003_s27 + $0xc8] sm:$0xff] }
  0xb7   : > { %510 = vmatpush.xpose.msra.mxu0 %v455_v31  ;;  %623 = vmatpush.xpose.msra.mxu1 %v456_v32  ;;  %v401_v27 = vld [vmem:[%s2003_s27 + $0xd0] sm:$0xff]  ;;  %v402_v28 = vld [vmem:[%s2003_s27 + $0xd8] sm:$0xff]  ;;  %v403_v29 = vld [vmem:[%s2003_s27 + $0xe0] sm:$0xff] }
  0xb8   : > { %v404_v30 = vld [vmem:[%s2003_s27 + $0xe8] sm:$0xff]  ;;  %v405_v31 = vld [vmem:[%s2003_s27 + $0xf0] sm:$0xff]  ;;  %v406_v32 = vld [vmem:[%s2003_s27 + $0xf8] sm:$0xff] }
  0xba   : > { %737 = vmatpush.xpose.msra.mxu2 %v485_v33  ;;  %850 = vmatpush.xpose.msra.mxu3 %v486_v34  ;;  %v407_v33 = vld [vmem:[%s2003_s27 + $0x100] sm:$0xff]  ;;  %v408_v34 = vld [vmem:[%s2003_s27 + $0x108] sm:$0xff] }
  0xbb   : > { %511 = vmatpush.xpose.msra.mxu0 %v453_v35  ;;  %624 = vmatpush.xpose.msra.mxu1 %v454_v36  ;;  %v311_v36 = vld [vmem:[#allocation2 + $0xb0] sm:$0xff] }
  0xbe   : > { %738 = vmatpush.xpose.msra.mxu2 %v483_v37  ;;  %851 = vmatpush.xpose.msra.mxu3 %v484_v38 }
  0xbf   : > { %512 = vmatpush.xpose.msra.mxu0 %v451_v39  ;;  %625 = vmatpush.xpose.msra.mxu1 %v452_v40 }
  0xc2   : > { %739 = vmatpush.xpose.msra.mxu2 %v481_v41  ;;  %852 = vmatpush.xpose.msra.mxu3 %v482_v42  ;;  %v312_v41 = vld [vmem:[#allocation2 + $0x1b0] sm:$0xff] }
  0xc3   : > { %513 = vmatpush.xpose.msra.mxu0 %v449_v43  ;;  %626 = vmatpush.xpose.msra.mxu1 %v450_v44  ;;  %v409_v44 = vld [vmem:[%s2003_s27 + $0x110] sm:$0xff] }
  0xc6   : > { %740 = vmatpush.xpose.msra.mxu2 %v479_v45  ;;  %853 = vmatpush.xpose.msra.mxu3 %v480_v46  ;;  %v410_v45 = vld [vmem:[%s2003_s27 + $0x118] sm:$0xff] }
  0xc7   : > { %514 = vmatpush.xpose.msra.mxu0 %v447_v47  ;;  %627 = vmatpush.xpose.msra.mxu1 %v448_v48  ;;  %v313_v48 = vld [vmem:[#allocation2 + $0xd8] sm:$0xff] }
  0xca   : > { %741 = vmatpush.xpose.msra.mxu2 %v477_v49  ;;  %854 = vmatpush.xpose.msra.mxu3 %v478_v50 }
  0xcb   : > { %515 = vmatpush.xpose.msra.mxu0 %v445_v51  ;;  %628 = vmatpush.xpose.msra.mxu1 %v446_v52 }
  0xce   : > { %742 = vmatpush.xpose.msra.mxu2 %v475_v53  ;;  %855 = vmatpush.xpose.msra.mxu3 %v476_v54  ;;  %v314_v53 = vld [vmem:[#allocation2 + $0x18] sm:$0xff] }
  0xcf   : > { %516 = vmatpush.xpose.msra.mxu0 %v443_v55  ;;  %629 = vmatpush.xpose.msra.mxu1 %v444_v56  ;;  %v411_v56 = vld [vmem:[%s2003_s27 + $0x120] sm:$0xff] }
  0xd2   : > { %743 = vmatpush.xpose.msra.mxu2 %v473_v57  ;;  %856 = vmatpush.xpose.msra.mxu3 %v474_v58  ;;  %v412_v57 = vld [vmem:[%s2003_s27 + $0x128] sm:$0xff] }
  0xd3   : > { %517 = vmatpush.xpose.msra.mxu0 %v441_v59  ;;  %630 = vmatpush.xpose.msra.mxu1 %v442_v60  ;;  %v315_v60 = vld [vmem:[#allocation2 + $0x50] sm:$0xff] }
  0xd6   : > { %744 = vmatpush.xpose.msra.mxu2 %v471_v61  ;;  %857 = vmatpush.xpose.msra.mxu3 %v472_v62 }
  0xd7   : > { %518 = vmatpush.xpose.msra.mxu0 %v439_v63  ;;  %631 = vmatpush.xpose.msra.mxu1 %v440_v0 }
  0xd9   : > { %745 = vmatmul.f32.vlgmr.msra.gmra.mxu2 %v375_v1  ;;  %858 = vmatmul.f32.vlgmr.msra.gmra.mxu3 %v376_v2 }
  0xda   : > { %519 = vmatmul.f32.vlgmr.msra.gmra.mxu0 %v375_v1  ;;  %632 = vmatmul.f32.vlgmr.msra.gmra.mxu1 %v376_v2  ;;  %v316_v1 = vld [vmem:[#allocation2 + $0x168] sm:$0xff] }
  0xe1   : > { %748 = vmatmul.f32.gmra.mxu2 %v377_v3  ;;  %861 = vmatmul.f32.gmra.mxu3 %v378_v4 }
  0xe2   : > { %522 = vmatmul.f32.gmra.mxu0 %v377_v3  ;;  %635 = vmatmul.f32.gmra.mxu1 %v378_v4  ;;  %v413_v4 = vld [vmem:[%s2003_s27 + $0x130] sm:$0xff] }
  0xe9   : > { %751 = vmatmul.f32.gmra.mxu2 %v379_v5  ;;  %864 = vmatmul.f32.gmra.mxu3 %v380_v6 }
  0xea   : > { %525 = vmatmul.f32.gmra.mxu0 %v379_v5  ;;  %638 = vmatmul.f32.gmra.mxu1 %v380_v6  ;;  %v414_v5 = vld [vmem:[%s2003_s27 + $0x138] sm:$0xff] }
  0xf1   : > { %754 = vmatmul.f32.gmra.mxu2 %v381_v7  ;;  %867 = vmatmul.f32.gmra.mxu3 %v382_v8 }
  0xf2   : > { %528 = vmatmul.f32.gmra.mxu0 %v381_v7  ;;  %641 = vmatmul.f32.gmra.mxu1 %v382_v8  ;;  %v317_v8 = vld [vmem:[#allocation2 + $0x130] sm:$0xff] }
  0xf9   : > { %757 = vmatmul.f32.gmra.mxu2 %v383_v9  ;;  %870 = vmatmul.f32.gmra.mxu3 %v384_v10 }
  0xfa   : > { %531 = vmatmul.f32.gmra.mxu0 %v383_v9  ;;  %644 = vmatmul.f32.gmra.mxu1 %v384_v10 }
 0x101   : > { %760 = vmatmul.f32.gmra.mxu2 %v385_v11  ;;  %873 = vmatmul.f32.gmra.mxu3 %v386_v12 }
 0x102   : > { %534 = vmatmul.f32.gmra.mxu0 %v385_v11  ;;  %647 = vmatmul.f32.gmra.mxu1 %v386_v12 }
 0x109   : > { %763 = vmatmul.f32.gmra.mxu2 %v387_v13  ;;  %876 = vmatmul.f32.gmra.mxu3 %v388_v14 }
 0x10a   : > { %537 = vmatmul.f32.gmra.mxu0 %v387_v13  ;;  %650 = vmatmul.f32.gmra.mxu1 %v388_v14  ;;  %v318_v13 = vld [vmem:[#allocation2 + $0x48] sm:$0xff] }
 0x111   : > { %766 = vmatmul.f32.gmra.mxu2 %v389_v15  ;;  %879 = vmatmul.f32.gmra.mxu3 %v390_v16 }
 0x112   : > { %540 = vmatmul.f32.gmra.mxu0 %v389_v15  ;;  %653 = vmatmul.f32.gmra.mxu1 %v390_v16  ;;  %v415_v16 = vld [vmem:[%s2003_s27 + $0x140] sm:$0xff] }
 0x119   : > { %769 = vmatmul.f32.gmra.mxu2 %v391_v17  ;;  %882 = vmatmul.f32.gmra.mxu3 %v392_v18 }
 0x11a   : > { %543 = vmatmul.f32.gmra.mxu0 %v391_v17  ;;  %656 = vmatmul.f32.gmra.mxu1 %v392_v18  ;;  %v416_v17 = vld [vmem:[%s2003_s27 + $0x148] sm:$0xff] }
 0x121   : > { %772 = vmatmul.f32.gmra.mxu2 %v393_v19  ;;  %885 = vmatmul.f32.gmra.mxu3 %v394_v20 }
 0x122   : > { %546 = vmatmul.f32.gmra.mxu0 %v393_v19  ;;  %659 = vmatmul.f32.gmra.mxu1 %v394_v20  ;;  %v319_v20 = vld [vmem:[#allocation2 + $0x180] sm:$0xff] }
 0x129   : > { %775 = vmatmul.f32.gmra.mxu2 %v395_v21  ;;  %888 = vmatmul.f32.gmra.mxu3 %v396_v22 }
 0x12a   : > { %549 = vmatmul.f32.gmra.mxu0 %v395_v21  ;;  %662 = vmatmul.f32.gmra.mxu1 %v396_v22 }
 0x131   : > { %778 = vmatmul.f32.gmra.mxu2 %v397_v23  ;;  %891 = vmatmul.f32.gmra.mxu3 %v398_v24 }
 0x132   : > { %552 = vmatmul.f32.gmra.mxu0 %v397_v23  ;;  %665 = vmatmul.f32.gmra.mxu1 %v398_v24 }
 0x139   : > { %781 = vmatmul.f32.gmra.mxu2 %v399_v25  ;;  %894 = vmatmul.f32.gmra.mxu3 %v400_v26 }
 0x13a   : > { %555 = vmatmul.f32.gmra.mxu0 %v399_v25  ;;  %668 = vmatmul.f32.gmra.mxu1 %v400_v26  ;;  %v320_v25 = vld [vmem:[#allocation2 + $0x110] sm:$0xff] }
 0x141   : > { %784 = vmatmul.f32.gmra.mxu2 %v401_v27  ;;  %897 = vmatmul.f32.gmra.mxu3 %v402_v28 }
 0x142   : > { %558 = vmatmul.f32.gmra.mxu0 %v401_v27  ;;  %671 = vmatmul.f32.gmra.mxu1 %v402_v28  ;;  %v417_v28 = vld [vmem:[%s2003_s27 + $0x150] sm:$0xff] }
 0x149   : > { %787 = vmatmul.f32.gmra.mxu2 %v403_v29  ;;  %900 = vmatmul.f32.gmra.mxu3 %v404_v30 }
 0x14a   : > { %561 = vmatmul.f32.gmra.mxu0 %v403_v29  ;;  %674 = vmatmul.f32.gmra.mxu1 %v404_v30  ;;  %v418_v29 = vld [vmem:[%s2003_s27 + $0x158] sm:$0xff] }
 0x151   : > { %790 = vmatmul.f32.gmra.mxu2 %v405_v31  ;;  %903 = vmatmul.f32.gmra.mxu3 %v406_v32 }
 0x152   : > { %564 = vmatmul.f32.gmra.mxu0 %v405_v31  ;;  %677 = vmatmul.f32.gmra.mxu1 %v406_v32  ;;  %v321_v32 = vld [vmem:[#allocation2 + $0x118] sm:$0xff] }
 0x157   : > { %v520_v35 = vpop.f32.mrf.mxu0  ;;  %v633_v37 = vpop.f32.mrf.mxu1 }
 0x158   : > { %v634_v38 = vadd.f32 %v633_v37, %v520_v35  ;;  %v322_v37 = vld [vmem:[#allocation2 + $0x98] sm:$0xff] }
 0x159   : > { %793 = vmatmul.f32.gmra.mxu2 %v407_v33  ;;  %906 = vmatmul.f32.gmra.mxu3 %v408_v34 }
 0x15a   : > { %v955_v39 = vadd.f32 %v634_v38, %v311_v36  ;;  %567 = vmatmul.f32.gmra.mxu0 %v407_v33  ;;  %680 = vmatmul.f32.gmra.mxu1 %v408_v34 }
 0x15c   : > { %1019 = vst [vmem:[#allocation2 + $0xb0] sm:$0xff] %v955_v39  ;;  %v746_v40 = vpop.f32.mrf.mxu2  ;;  %v859_v42 = vpop.f32.mrf.mxu3 }
 0x15d   : > { %1147 = vst [vmem:[%s2019_s19] sm:$0xff] %v955_v39  ;;  %v860_v43 = vadd.f32 %v859_v42, %v746_v40  ;;  %v419_v40 = vld [vmem:[%s2003_s27 + $0x160] sm:$0xff] }
 0x15f   : > { %v956_v46 = vadd.f32 %v860_v43, %v312_v41  ;;  %v523_v47 = vpop.f32.mrf.mxu0  ;;  %v636_v49 = vpop.f32.mrf.mxu1  ;;  %v420_v41 = vld [vmem:[%s2003_s27 + $0x168] sm:$0xff] }
 0x160   : > { %v637_v50 = vadd.f32 %v636_v49, %v523_v47  ;;  %v324_v49 = vld [vmem:[#allocation2 + $0x150] sm:$0xff] }
 0x161   : > { %1020 = vst [vmem:[#allocation2 + $0x1b0] sm:$0xff] %v956_v46  ;;  %796 = vmatmul.f32.gmra.mxu2 %v409_v44  ;;  %909 = vmatmul.f32.gmra.mxu3 %v410_v45 }
 0x162   : > { %1148 = vst [vmem:[%s2019_s19 + $0x8] sm:$0xff] %v956_v46  ;;  %v957_v51 = vadd.f32 %v637_v50, %v313_v48  ;;  %570 = vmatmul.f32.gmra.mxu0 %v409_v44  ;;  %683 = vmatmul.f32.gmra.mxu1 %v410_v45  ;;  %v323_v44 = vld [vmem:[#allocation2 + $0x120] sm:$0xff] }
 0x164   : > { %1021 = vst [vmem:[#allocation2 + $0xd8] sm:$0xff] %v957_v51  ;;  %v749_v52 = vpop.f32.mrf.mxu2  ;;  %v862_v54 = vpop.f32.mrf.mxu3 }
 0x165   : > { %1149 = vst [vmem:[%s2019_s19 + $0x10] sm:$0xff] %v957_v51  ;;  %v863_v55 = vadd.f32 %v862_v54, %v749_v52  ;;  %v421_v52 = vld [vmem:[%s2003_s27 + $0x170] sm:$0xff] }
 0x167   : > { %v958_v58 = vadd.f32 %v863_v55, %v314_v53  ;;  %v526_v59 = vpop.f32.mrf.mxu0  ;;  %v639_v61 = vpop.f32.mrf.mxu1  ;;  %v422_v53 = vld [vmem:[%s2003_s27 + $0x178] sm:$0xff] }
 0x168   : > { %v640_v62 = vadd.f32 %v639_v61, %v526_v59  ;;  %v326_v61 = vld [vmem:[#allocation2 + $0x60] sm:$0xff] }
 0x169   : > { %1022 = vst [vmem:[#allocation2 + $0x18] sm:$0xff] %v958_v58  ;;  %799 = vmatmul.f32.gmra.mxu2 %v411_v56  ;;  %912 = vmatmul.f32.gmra.mxu3 %v412_v57 }
 0x16a   : > { %1150 = vst [vmem:[%s2019_s19 + $0x18] sm:$0xff] %v958_v58  ;;  %v959_v63 = vadd.f32 %v640_v62, %v315_v60  ;;  %573 = vmatmul.f32.gmra.mxu0 %v411_v56  ;;  %686 = vmatmul.f32.gmra.mxu1 %v412_v57  ;;  %v325_v56 = vld [vmem:[#allocation2 + $0x108] sm:$0xff] }
 0x16c   : > { %1023 = vst [vmem:[#allocation2 + $0x50] sm:$0xff] %v959_v63  ;;  %v752_v0 = vpop.f32.mrf.mxu2  ;;  %v865_v2 = vpop.f32.mrf.mxu3 }
 0x16d   : > { %1151 = vst [vmem:[%s2019_s19 + $0x20] sm:$0xff] %v959_v63  ;;  %v866_v3 = vadd.f32 %v865_v2, %v752_v0  ;;  %v423_v0 = vld [vmem:[%s2003_s27 + $0x180] sm:$0xff] }
 0x16f   : > { %v960_v6 = vadd.f32 %v866_v3, %v316_v1  ;;  %v529_v7 = vpop.f32.mrf.mxu0  ;;  %v642_v9 = vpop.f32.mrf.mxu1  ;;  %v424_v1 = vld [vmem:[%s2003_s27 + $0x188] sm:$0xff] }
 0x170   : > { %v643_v10 = vadd.f32 %v642_v9, %v529_v7  ;;  %v328_v9 = vld [vmem:[#allocation2 + $0x188] sm:$0xff] }
 0x171   : > { %1024 = vst [vmem:[#allocation2 + $0x168] sm:$0xff] %v960_v6  ;;  %802 = vmatmul.f32.gmra.mxu2 %v413_v4  ;;  %915 = vmatmul.f32.gmra.mxu3 %v414_v5 }
 0x172   : > { %1152 = vst [vmem:[%s2019_s19 + $0x28] sm:$0xff] %v960_v6  ;;  %v961_v11 = vadd.f32 %v643_v10, %v317_v8  ;;  %576 = vmatmul.f32.gmra.mxu0 %v413_v4  ;;  %689 = vmatmul.f32.gmra.mxu1 %v414_v5  ;;  %v327_v4 = vld [vmem:[#allocation2 + $0xe0] sm:$0xff] }
 0x174   : > { %1025 = vst [vmem:[#allocation2 + $0x130] sm:$0xff] %v961_v11  ;;  %v755_v12 = vpop.f32.mrf.mxu2  ;;  %v868_v14 = vpop.f32.mrf.mxu3 }
 0x175   : > { %1153 = vst [vmem:[%s2019_s19 + $0x30] sm:$0xff] %v961_v11  ;;  %v869_v15 = vadd.f32 %v868_v14, %v755_v12  ;;  %v425_v12 = vld [vmem:[%s2003_s27 + $0x190] sm:$0xff] }
 0x177   : > { %v962_v18 = vadd.f32 %v869_v15, %v318_v13  ;;  %v532_v19 = vpop.f32.mrf.mxu0  ;;  %v645_v21 = vpop.f32.mrf.mxu1  ;;  %v426_v13 = vld [vmem:[%s2003_s27 + $0x198] sm:$0xff] }
 0x178   : > { %v646_v22 = vadd.f32 %v645_v21, %v532_v19  ;;  %v330_v21 = vld [vmem:[#allocation2 + $0x140] sm:$0xff] }
 0x179   : > { %1026 = vst [vmem:[#allocation2 + $0x48] sm:$0xff] %v962_v18  ;;  %805 = vmatmul.f32.gmra.mxu2 %v415_v16  ;;  %918 = vmatmul.f32.gmra.mxu3 %v416_v17 }
 0x17a   : > { %1154 = vst [vmem:[%s2019_s19 + $0x38] sm:$0xff] %v962_v18  ;;  %v963_v23 = vadd.f32 %v646_v22, %v319_v20  ;;  %579 = vmatmul.f32.gmra.mxu0 %v415_v16  ;;  %692 = vmatmul.f32.gmra.mxu1 %v416_v17  ;;  %v329_v16 = vld [vmem:[#allocation2 + $0x138] sm:$0xff] }
 0x17c   : > { %1027 = vst [vmem:[#allocation2 + $0x180] sm:$0xff] %v963_v23  ;;  %v758_v24 = vpop.f32.mrf.mxu2  ;;  %v871_v26 = vpop.f32.mrf.mxu3 }
 0x17d   : > { %1155 = vst [vmem:[%s2019_s19 + $0x40] sm:$0xff] %v963_v23  ;;  %v872_v27 = vadd.f32 %v871_v26, %v758_v24  ;;  %v427_v24 = vld [vmem:[%s2003_s27 + $0x1a0] sm:$0xff] }
 0x17f   : > { %v964_v30 = vadd.f32 %v872_v27, %v320_v25  ;;  %v535_v31 = vpop.f32.mrf.mxu0  ;;  %v648_v33 = vpop.f32.mrf.mxu1  ;;  %v428_v25 = vld [vmem:[%s2003_s27 + $0x1a8] sm:$0xff] }
 0x180   : > { %v649_v34 = vadd.f32 %v648_v33, %v535_v31  ;;  %v332_v33 = vld [vmem:[#allocation2 + $0x1a8] sm:$0xff] }
 0x181   : > { %1028 = vst [vmem:[#allocation2 + $0x110] sm:$0xff] %v964_v30  ;;  %808 = vmatmul.f32.gmra.mxu2 %v417_v28  ;;  %921 = vmatmul.f32.gmra.mxu3 %v418_v29 }
 0x182   : > { %1156 = vst [vmem:[%s2019_s19 + $0x48] sm:$0xff] %v964_v30  ;;  %v965_v35 = vadd.f32 %v649_v34, %v321_v32  ;;  %582 = vmatmul.f32.gmra.mxu0 %v417_v28  ;;  %695 = vmatmul.f32.gmra.mxu1 %v418_v29  ;;  %v331_v28 = vld [vmem:[#allocation2 + $0x80] sm:$0xff] }
 0x184   : > { %1029 = vst [vmem:[#allocation2 + $0x118] sm:$0xff] %v965_v35  ;;  %v761_v36 = vpop.f32.mrf.mxu2  ;;  %v874_v38 = vpop.f32.mrf.mxu3 }
 0x185   : > { %1157 = vst [vmem:[%s2019_s19 + $0x50] sm:$0xff] %v965_v35  ;;  %v875_v39 = vadd.f32 %v874_v38, %v761_v36  ;;  %v429_v36 = vld [vmem:[%s2003_s27 + $0x1b0] sm:$0xff] }
 0x187   : > { %v966_v42 = vadd.f32 %v875_v39, %v322_v37  ;;  %v538_v43 = vpop.f32.mrf.mxu0  ;;  %v651_v45 = vpop.f32.mrf.mxu1  ;;  %v430_v37 = vld [vmem:[%s2003_s27 + $0x1b8] sm:$0xff] }
 0x188   : > { %v652_v46 = vadd.f32 %v651_v45, %v538_v43  ;;  %v334_v45 = vld [vmem:[#allocation2 + $0x28] sm:$0xff] }
 0x189   : > { %1030 = vst [vmem:[#allocation2 + $0x98] sm:$0xff] %v966_v42  ;;  %811 = vmatmul.f32.gmra.mxu2 %v419_v40  ;;  %924 = vmatmul.f32.gmra.mxu3 %v420_v41 }
 0x18a   : > { %1158 = vst [vmem:[%s2019_s19 + $0x58] sm:$0xff] %v966_v42  ;;  %v967_v47 = vadd.f32 %v652_v46, %v323_v44  ;;  %585 = vmatmul.f32.gmra.mxu0 %v419_v40  ;;  %698 = vmatmul.f32.gmra.mxu1 %v420_v41  ;;  %v333_v40 = vld [vmem:[#allocation2 + $0x1b8] sm:$0xff] }
 0x18c   : > { %1031 = vst [vmem:[#allocation2 + $0x120] sm:$0xff] %v967_v47  ;;  %v764_v48 = vpop.f32.mrf.mxu2  ;;  %v877_v50 = vpop.f32.mrf.mxu3 }
 0x18d   : > { %1159 = vst [vmem:[%s2019_s19 + $0x60] sm:$0xff] %v967_v47  ;;  %v878_v51 = vadd.f32 %v877_v50, %v764_v48  ;;  %v431_v48 = vld [vmem:[%s2003_s27 + $0x1c0] sm:$0xff] }
 0x18f   : > { %v968_v54 = vadd.f32 %v878_v51, %v324_v49  ;;  %v541_v55 = vpop.f32.mrf.mxu0  ;;  %v654_v57 = vpop.f32.mrf.mxu1  ;;  %v432_v49 = vld [vmem:[%s2003_s27 + $0x1c8] sm:$0xff] }
 0x190   : > { %v655_v58 = vadd.f32 %v654_v57, %v541_v55  ;;  %v336_v57 = vld [vmem:[#allocation2 + $0xf8] sm:$0xff] }
 0x191   : > { %1032 = vst [vmem:[#allocation2 + $0x150] sm:$0xff] %v968_v54  ;;  %814 = vmatmul.f32.gmra.mxu2 %v421_v52  ;;  %927 = vmatmul.f32.gmra.mxu3 %v422_v53 }
 0x192   : > { %1160 = vst [vmem:[%s2019_s19 + $0x68] sm:$0xff] %v968_v54  ;;  %v969_v59 = vadd.f32 %v655_v58, %v325_v56  ;;  %588 = vmatmul.f32.gmra.mxu0 %v421_v52  ;;  %701 = vmatmul.f32.gmra.mxu1 %v422_v53  ;;  %v335_v52 = vld [vmem:[#allocation2 + $0x1e8] sm:$0xff] }
 0x194   : > { %1033 = vst [vmem:[#allocation2 + $0x108] sm:$0xff] %v969_v59  ;;  %v767_v60 = vpop.f32.mrf.mxu2  ;;  %v880_v62 = vpop.f32.mrf.mxu3 }
 0x195   : > { %1161 = vst [vmem:[%s2019_s19 + $0x70] sm:$0xff] %v969_v59  ;;  %v881_v63 = vadd.f32 %v880_v62, %v767_v60  ;;  %v433_v60 = vld [vmem:[%s2003_s27 + $0x1d0] sm:$0xff] }
 0x197   : > { %v970_v2 = vadd.f32 %v881_v63, %v326_v61  ;;  %v544_v3 = vpop.f32.mrf.mxu0  ;;  %v657_v5 = vpop.f32.mrf.mxu1  ;;  %v434_v61 = vld [vmem:[%s2003_s27 + $0x1d8] sm:$0xff] }
 0x198   : > { %v658_v6 = vadd.f32 %v657_v5, %v544_v3  ;;  %v338_v5 = vld [vmem:[#allocation2 + $0x30] sm:$0xff] }
 0x199   : > { %1034 = vst [vmem:[#allocation2 + $0x60] sm:$0xff] %v970_v2  ;;  %817 = vmatmul.f32.gmra.mxu2 %v423_v0  ;;  %930 = vmatmul.f32.gmra.mxu3 %v424_v1 }
 0x19a   : > { %1162 = vst [vmem:[%s2019_s19 + $0x78] sm:$0xff] %v970_v2  ;;  %v971_v7 = vadd.f32 %v658_v6, %v327_v4  ;;  %591 = vmatmul.f32.gmra.mxu0 %v423_v0  ;;  %704 = vmatmul.f32.gmra.mxu1 %v424_v1  ;;  %v337_v0 = vld [vmem:[#allocation2 + $0x160] sm:$0xff] }
 0x19c   : > { %1035 = vst [vmem:[#allocation2 + $0xe0] sm:$0xff] %v971_v7  ;;  %v770_v8 = vpop.f32.mrf.mxu2  ;;  %v883_v10 = vpop.f32.mrf.mxu3 }
 0x19d   : > { %1163 = vst [vmem:[%s2019_s19 + $0x80] sm:$0xff] %v971_v7  ;;  %v884_v11 = vadd.f32 %v883_v10, %v770_v8  ;;  %v435_v8 = vld [vmem:[%s2003_s27 + $0x1e0] sm:$0xff] }
 0x19f   : > { %v972_v14 = vadd.f32 %v884_v11, %v328_v9  ;;  %v547_v15 = vpop.f32.mrf.mxu0  ;;  %v660_v17 = vpop.f32.mrf.mxu1  ;;  %v436_v9 = vld [vmem:[%s2003_s27 + $0x1e8] sm:$0xff] }
 0x1a0   : > { %v661_v18 = vadd.f32 %v660_v17, %v547_v15  ;;  %v340_v17 = vld [vmem:[#allocation2] sm:$0xff] }
 0x1a1   : > { %1036 = vst [vmem:[#allocation2 + $0x188] sm:$0xff] %v972_v14  ;;  %820 = vmatmul.f32.gmra.mxu2 %v425_v12  ;;  %933 = vmatmul.f32.gmra.mxu3 %v426_v13 }
 0x1a2   : > { %1164 = vst [vmem:[%s2019_s19 + $0x88] sm:$0xff] %v972_v14  ;;  %v973_v19 = vadd.f32 %v661_v18, %v329_v16  ;;  %594 = vmatmul.f32.gmra.mxu0 %v425_v12  ;;  %707 = vmatmul.f32.gmra.mxu1 %v426_v13  ;;  %v339_v12 = vld [vmem:[#allocation2 + $0x1e0] sm:$0xff] }
 0x1a4   : > { %1037 = vst [vmem:[#allocation2 + $0x138] sm:$0xff] %v973_v19  ;;  %v773_v20 = vpop.f32.mrf.mxu2  ;;  %v886_v22 = vpop.f32.mrf.mxu3 }
 0x1a5   : > { %1165 = vst [vmem:[%s2019_s19 + $0x90] sm:$0xff] %v973_v19  ;;  %v887_v23 = vadd.f32 %v886_v22, %v773_v20  ;;  %v437_v20 = vld [vmem:[%s2003_s27 + $0x1f0] sm:$0xff] }
 0x1a7   : > { %v974_v26 = vadd.f32 %v887_v23, %v330_v21  ;;  %v550_v27 = vpop.f32.mrf.mxu0  ;;  %v663_v29 = vpop.f32.mrf.mxu1  ;;  %v438_v21 = vld [vmem:[%s2003_s27 + $0x1f8] sm:$0xff]  ;;  %s1227_s27 = sshll.u32 %s2019_s19, 4  ;;  %s1228_s27 = int_to_ptr.vmem [resolvable:$true] %s1227_s27 }
 0x1a8   : > { %v664_v30 = vadd.f32 %v663_v29, %v550_v27  ;;  %v342_v29 = vld [vmem:[#allocation2 + $0x8] sm:$0xff] }
 0x1a9   : > { %1038 = vst [vmem:[#allocation2 + $0x140] sm:$0xff] %v974_v26  ;;  %823 = vmatmul.f32.gmra.mxu2 %v427_v24  ;;  %936 = vmatmul.f32.gmra.mxu3 %v428_v25 }
 0x1aa   : > { %1166 = vst [vmem:[%s2019_s19 + $0x98] sm:$0xff] %v974_v26  ;;  %v975_v31 = vadd.f32 %v664_v30, %v331_v28  ;;  %597 = vmatmul.f32.gmra.mxu0 %v427_v24  ;;  %710 = vmatmul.f32.gmra.mxu1 %v428_v25  ;;  %v341_v24 = vld [vmem:[#allocation2 + $0xf0] sm:$0xff] }
 0x1ac   : > { %1039 = vst [vmem:[#allocation2 + $0x80] sm:$0xff] %v975_v31  ;;  %v776_v32 = vpop.f32.mrf.mxu2  ;;  %v889_v34 = vpop.f32.mrf.mxu3 }
 0x1ad   : > { %1167 = vst [vmem:[%s2019_s19 + $0xa0] sm:$0xff] %v975_v31  ;;  %v890_v35 = vadd.f32 %v889_v34, %v776_v32  ;;  %v343_v34 = vld [vmem:[#allocation2 + $0x148] sm:$0xff] }
 0x1af   : > { %v976_v38 = vadd.f32 %v890_v35, %v332_v33  ;;  %v553_v39 = vpop.f32.mrf.mxu0  ;;  %v666_v41 = vpop.f32.mrf.mxu1 }
 0x1b0   : > { %v667_v42 = vadd.f32 %v666_v41, %v553_v39  ;;  %v344_v39 = vld [vmem:[#allocation2 + $0x1d0] sm:$0xff] }
 0x1b1   : > { %1040 = vst [vmem:[#allocation2 + $0x1a8] sm:$0xff] %v976_v38  ;;  %826 = vmatmul.f32.gmra.mxu2 %v429_v36  ;;  %939 = vmatmul.f32.gmra.mxu3 %v430_v37 }
 0x1b2   : > { %1168 = vst [vmem:[%s2019_s19 + $0xa8] sm:$0xff] %v976_v38  ;;  %v977_v43 = vadd.f32 %v667_v42, %v333_v40  ;;  %600 = vmatmul.f32.gmra.mxu0 %v429_v36  ;;  %713 = vmatmul.f32.gmra.mxu1 %v430_v37 }
 0x1b4   : > { %1041 = vst [vmem:[#allocation2 + $0x1b8] sm:$0xff] %v977_v43  ;;  %v779_v44 = vpop.f32.mrf.mxu2  ;;  %v892_v46 = vpop.f32.mrf.mxu3 }
 0x1b5   : > { %1169 = vst [vmem:[%s2019_s19 + $0xb0] sm:$0xff] %v977_v43  ;;  %v893_v47 = vadd.f32 %v892_v46, %v779_v44  ;;  %v345_v44 = vld [vmem:[#allocation2 + $0x100] sm:$0xff] }
 0x1b7   : > { %v978_v50 = vadd.f32 %v893_v47, %v334_v45  ;;  %v556_v51 = vpop.f32.mrf.mxu0  ;;  %v669_v53 = vpop.f32.mrf.mxu1 }
 0x1b8   : > { %v670_v54 = vadd.f32 %v669_v53, %v556_v51 }
 0x1b9   : > { %1042 = vst [vmem:[#allocation2 + $0x28] sm:$0xff] %v978_v50  ;;  %829 = vmatmul.f32.gmra.mxu2 %v431_v48  ;;  %942 = vmatmul.f32.gmra.mxu3 %v432_v49 }
 0x1ba   : > { %1170 = vst [vmem:[%s2019_s19 + $0xb8] sm:$0xff] %v978_v50  ;;  %v979_v55 = vadd.f32 %v670_v54, %v335_v52  ;;  %603 = vmatmul.f32.gmra.mxu0 %v431_v48  ;;  %716 = vmatmul.f32.gmra.mxu1 %v432_v49  ;;  %v346_v49 = vld [vmem:[#allocation2 + $0xc8] sm:$0xff]  ;;  %v347_v54 = vld [vmem:[#allocation2 + $0x40] sm:$0xff] }
 0x1bc   : > { %1043 = vst [vmem:[#allocation2 + $0x1e8] sm:$0xff] %v979_v55  ;;  %v782_v56 = vpop.f32.mrf.mxu2  ;;  %v895_v58 = vpop.f32.mrf.mxu3 }
 0x1bd   : > { %1171 = vst [vmem:[%s2019_s19 + $0xc0] sm:$0xff] %v979_v55  ;;  %v896_v59 = vadd.f32 %v895_v58, %v782_v56 }
 0x1bf   : > { %v980_v62 = vadd.f32 %v896_v59, %v336_v57  ;;  %v559_v63 = vpop.f32.mrf.mxu0  ;;  %v672_v1 = vpop.f32.mrf.mxu1  ;;  %v348_v59 = vld [vmem:[#allocation2 + $0x1f8] sm:$0xff] }
 0x1c0   : > { %v673_v2 = vadd.f32 %v672_v1, %v559_v63 }
 0x1c1   : > { %1044 = vst [vmem:[#allocation2 + $0xf8] sm:$0xff] %v980_v62  ;;  %832 = vmatmul.f32.gmra.mxu2 %v433_v60  ;;  %945 = vmatmul.f32.gmra.mxu3 %v434_v61 }
 0x1c2   : > { %1172 = vst [vmem:[%s2019_s19 + $0xc8] sm:$0xff] %v980_v62  ;;  %v981_v3 = vadd.f32 %v673_v2, %v337_v0  ;;  %606 = vmatmul.f32.gmra.mxu0 %v433_v60  ;;  %719 = vmatmul.f32.gmra.mxu1 %v434_v61  ;;  %v349_v0 = vld [vmem:[#allocation2 + $0x20] sm:$0xff] }
 0x1c4   : > { %1045 = vst [vmem:[#allocation2 + $0x160] sm:$0xff] %v981_v3  ;;  %v785_v4 = vpop.f32.mrf.mxu2  ;;  %v898_v6 = vpop.f32.mrf.mxu3 }
 0x1c5   : > { %1173 = vst [vmem:[%s2019_s19 + $0xd0] sm:$0xff] %v981_v3  ;;  %v899_v7 = vadd.f32 %v898_v6, %v785_v4 }
 0x1c7   : > { %v982_v10 = vadd.f32 %v899_v7, %v338_v5  ;;  %v562_v11 = vpop.f32.mrf.mxu0  ;;  %v675_v13 = vpop.f32.mrf.mxu1  ;;  %v350_v5 = vld [vmem:[#allocation2 + $0x128] sm:$0xff] }
 0x1c8   : > { %v676_v14 = vadd.f32 %v675_v13, %v562_v11 }
 0x1c9   : > { %1046 = vst [vmem:[#allocation2 + $0x30] sm:$0xff] %v982_v10  ;;  %835 = vmatmul.f32.gmra.mxu2 %v435_v8  ;;  %948 = vmatmul.f32.gmra.mxu3 %v436_v9 }
 0x1ca   : > { %1174 = vst [vmem:[%s2019_s19 + $0xd8] sm:$0xff] %v982_v10  ;;  %v983_v15 = vadd.f32 %v676_v14, %v339_v12  ;;  %609 = vmatmul.f32.gmra.mxu0 %v435_v8  ;;  %722 = vmatmul.f32.gmra.mxu1 %v436_v9  ;;  %v351_v10 = vld [vmem:[#allocation2 + $0x1a0] sm:$0xff] }
 0x1cc   : > { %1047 = vst [vmem:[#allocation2 + $0x1e0] sm:$0xff] %v983_v15  ;;  %v788_v16 = vpop.f32.mrf.mxu2  ;;  %v901_v18 = vpop.f32.mrf.mxu3 }
 0x1cd   : > { %1175 = vst [vmem:[%s2019_s19 + $0xe0] sm:$0xff] %v983_v15  ;;  %v902_v19 = vadd.f32 %v901_v18, %v788_v16  ;;  %v352_v15 = vld [vmem:[#allocation2 + $0x1f0] sm:$0xff] }
 0x1cf   : > { %v984_v22 = vadd.f32 %v902_v19, %v340_v17  ;;  %v565_v23 = vpop.f32.mrf.mxu0  ;;  %v678_v25 = vpop.f32.mrf.mxu1 }
 0x1d0   : > { %v679_v26 = vadd.f32 %v678_v25, %v565_v23  ;;  %v354_v25 = vld [vmem:[#allocation2 + $0x78] sm:$0xff] }
 0x1d1   : > { %1048 = vst [vmem:[#allocation2] sm:$0xff] %v984_v22  ;;  %838 = vmatmul.f32.gmra.mxu2 %v437_v20  ;;  %951 = vmatmul.f32.gmra.mxu3 %v438_v21 }
 0x1d2   : > { %1176 = vst [vmem:[%s2019_s19 + $0xe8] sm:$0xff] %v984_v22  ;;  %v985_v27 = vadd.f32 %v679_v26, %v341_v24  ;;  %612 = vmatmul.f32.gmra.mxu0 %v437_v20  ;;  %725 = vmatmul.f32.gmra.mxu1 %v438_v21  ;;  %v353_v20 = vld [vmem:[#allocation2 + $0xe8] sm:$0xff] }
 0x1d4   : > { %1049 = vst [vmem:[#allocation2 + $0xf0] sm:$0xff] %v985_v27  ;;  %v791_v28 = vpop.f32.mrf.mxu2  ;;  %v904_v30 = vpop.f32.mrf.mxu3 }
 0x1d5   : > { %1177 = vst [vmem:[%s2019_s19 + $0xf0] sm:$0xff] %v985_v27  ;;  %v905_v31 = vadd.f32 %v904_v30, %v791_v28  ;;  %v355_v30 = vld [vmem:[#allocation2 + $0x70] sm:$0xff] }
 0x1d7   : > { %v986_v32 = vadd.f32 %v905_v31, %v342_v29  ;;  %v568_v33 = vpop.f32.mrf.mxu0  ;;  %v681_v35 = vpop.f32.mrf.mxu1 }
 0x1d8   : > { %v682_v36 = vadd.f32 %v681_v35, %v568_v33  ;;  %v356_v35 = vld [vmem:[#allocation2 + $0x90] sm:$0xff] }
 0x1d9   : > { %1050 = vst [vmem:[#allocation2 + $0x8] sm:$0xff] %v986_v32 }
 0x1da   : > { %1178 = vst [vmem:[%s2019_s19 + $0xf8] sm:$0xff] %v986_v32  ;;  %v987_v37 = vadd.f32 %v682_v36, %v343_v34 }
 0x1dc   : > { %1051 = vst [vmem:[#allocation2 + $0x148] sm:$0xff] %v987_v37  ;;  %v794_v38 = vpop.f32.mrf.mxu2  ;;  %v907_v40 = vpop.f32.mrf.mxu3 }
 0x1dd   : > { %1179 = vst [vmem:[%s2019_s19 + $0x100] sm:$0xff] %v987_v37  ;;  %v908_v41 = vadd.f32 %v907_v40, %v794_v38  ;;  %v357_v40 = vld [vmem:[#allocation2 + $0x1d8] sm:$0xff] }
 0x1df   : > { %v988_v42 = vadd.f32 %v908_v41, %v344_v39  ;;  %v571_v43 = vpop.f32.mrf.mxu0  ;;  %v684_v45 = vpop.f32.mrf.mxu1 }
 0x1e0   : > { %v685_v46 = vadd.f32 %v684_v45, %v571_v43  ;;  %v358_v45 = vld [vmem:[#allocation2 + $0xd0] sm:$0xff] }
 0x1e1   : > { %1052 = vst [vmem:[#allocation2 + $0x1d0] sm:$0xff] %v988_v42 }
 0x1e2   : > { %1180 = vst [vmem:[%s2019_s19 + $0x108] sm:$0xff] %v988_v42  ;;  %v989_v47 = vadd.f32 %v685_v46, %v345_v44 }
 0x1e4   : > { %1053 = vst [vmem:[#allocation2 + $0x100] sm:$0xff] %v989_v47  ;;  %v797_v48 = vpop.f32.mrf.mxu2  ;;  %v910_v50 = vpop.f32.mrf.mxu3 }
 0x1e5   : > { %1181 = vst [vmem:[%s2019_s19 + $0x110] sm:$0xff] %v989_v47  ;;  %v911_v51 = vadd.f32 %v910_v50, %v797_v48  ;;  %v359_v50 = vld [vmem:[#allocation2 + $0xb8] sm:$0xff] }
 0x1e7   : > { %v990_v52 = vadd.f32 %v911_v51, %v346_v49  ;;  %v574_v53 = vpop.f32.mrf.mxu0  ;;  %v687_v55 = vpop.f32.mrf.mxu1 }
 0x1e8   : > { %v688_v56 = vadd.f32 %v687_v55, %v574_v53  ;;  %v360_v55 = vld [vmem:[#allocation2 + $0x88] sm:$0xff] }
 0x1e9   : > { %1054 = vst [vmem:[#allocation2 + $0xc8] sm:$0xff] %v990_v52 }
 0x1ea   : > { %1182 = vst [vmem:[%s2019_s19 + $0x118] sm:$0xff] %v990_v52  ;;  %v991_v57 = vadd.f32 %v688_v56, %v347_v54 }
 0x1ec   : > { %1055 = vst [vmem:[#allocation2 + $0x40] sm:$0xff] %v991_v57  ;;  %v800_v58 = vpop.f32.mrf.mxu2  ;;  %v913_v60 = vpop.f32.mrf.mxu3 }
 0x1ed   : > { %1183 = vst [vmem:[%s2019_s19 + $0x120] sm:$0xff] %v991_v57  ;;  %v914_v61 = vadd.f32 %v913_v60, %v800_v58  ;;  %v361_v60 = vld [vmem:[#allocation2 + $0xa8] sm:$0xff] }
 0x1ef   : > { %v992_v62 = vadd.f32 %v914_v61, %v348_v59  ;;  %v577_v63 = vpop.f32.mrf.mxu0  ;;  %v690_v1 = vpop.f32.mrf.mxu1 }
 0x1f0   : > { %v691_v2 = vadd.f32 %v690_v1, %v577_v63  ;;  %v362_v1 = vld [vmem:[#allocation2 + $0x1c8] sm:$0xff] }
 0x1f1   : > { %1056 = vst [vmem:[#allocation2 + $0x1f8] sm:$0xff] %v992_v62 }
 0x1f2   : > { %1184 = vst [vmem:[%s2019_s19 + $0x128] sm:$0xff] %v992_v62  ;;  %v993_v3 = vadd.f32 %v691_v2, %v349_v0 }
 0x1f4   : > { %1057 = vst [vmem:[#allocation2 + $0x20] sm:$0xff] %v993_v3  ;;  %v803_v4 = vpop.f32.mrf.mxu2  ;;  %v916_v6 = vpop.f32.mrf.mxu3 }
 0x1f5   : > { %1185 = vst [vmem:[%s2019_s19 + $0x130] sm:$0xff] %v993_v3  ;;  %v917_v7 = vadd.f32 %v916_v6, %v803_v4  ;;  %v363_v6 = vld [vmem:[#allocation2 + $0x170] sm:$0xff] }
 0x1f7   : > { %v994_v8 = vadd.f32 %v917_v7, %v350_v5  ;;  %v580_v9 = vpop.f32.mrf.mxu0  ;;  %v693_v11 = vpop.f32.mrf.mxu1 }
 0x1f8   : > { %v694_v12 = vadd.f32 %v693_v11, %v580_v9  ;;  %v364_v11 = vld [vmem:[#allocation2 + $0x178] sm:$0xff] }
 0x1f9   : > { %1058 = vst [vmem:[#allocation2 + $0x128] sm:$0xff] %v994_v8 }
 0x1fa   : > { %1186 = vst [vmem:[%s2019_s19 + $0x138] sm:$0xff] %v994_v8  ;;  %v995_v13 = vadd.f32 %v694_v12, %v351_v10 }
 0x1fc   : > { %1059 = vst [vmem:[#allocation2 + $0x1a0] sm:$0xff] %v995_v13  ;;  %v806_v14 = vpop.f32.mrf.mxu2  ;;  %v919_v16 = vpop.f32.mrf.mxu3 }
 0x1fd   : > { %1187 = vst [vmem:[%s2019_s19 + $0x140] sm:$0xff] %v995_v13  ;;  %v920_v17 = vadd.f32 %v919_v16, %v806_v14  ;;  %v365_v16 = vld [vmem:[#allocation2 + $0x68] sm:$0xff] }
 0x1ff   : > { %v996_v18 = vadd.f32 %v920_v17, %v352_v15  ;;  %v583_v19 = vpop.f32.mrf.mxu0  ;;  %v696_v21 = vpop.f32.mrf.mxu1 }
 0x200   : > { %v697_v22 = vadd.f32 %v696_v21, %v583_v19  ;;  %v366_v21 = vld [vmem:[#allocation2 + $0x190] sm:$0xff] }
 0x201   : > { %1060 = vst [vmem:[#allocation2 + $0x1f0] sm:$0xff] %v996_v18 }
 0x202   : > { %1188 = vst [vmem:[%s2019_s19 + $0x148] sm:$0xff] %v996_v18  ;;  %v997_v23 = vadd.f32 %v697_v22, %v353_v20 }
 0x204   : > { %1061 = vst [vmem:[#allocation2 + $0xe8] sm:$0xff] %v997_v23  ;;  %v809_v24 = vpop.f32.mrf.mxu2  ;;  %v922_v26 = vpop.f32.mrf.mxu3 }
 0x205   : > { %1189 = vst [vmem:[%s2019_s19 + $0x150] sm:$0xff] %v997_v23  ;;  %v923_v27 = vadd.f32 %v922_v26, %v809_v24  ;;  %v367_v26 = vld [vmem:[#allocation2 + $0x198] sm:$0xff] }
 0x207   : > { %v998_v28 = vadd.f32 %v923_v27, %v354_v25  ;;  %v586_v29 = vpop.f32.mrf.mxu0  ;;  %v699_v31 = vpop.f32.mrf.mxu1 }
 0x208   : > { %v700_v32 = vadd.f32 %v699_v31, %v586_v29  ;;  %v368_v31 = vld [vmem:[#allocation2 + $0x38] sm:$0xff] }
 0x209   : > { %1062 = vst [vmem:[#allocation2 + $0x78] sm:$0xff] %v998_v28 }
 0x20a   : > { %1190 = vst [vmem:[%s2019_s19 + $0x158] sm:$0xff] %v998_v28  ;;  %v999_v33 = vadd.f32 %v700_v32, %v355_v30 }
 0x20c   : > { %1063 = vst [vmem:[#allocation2 + $0x70] sm:$0xff] %v999_v33  ;;  %v812_v34 = vpop.f32.mrf.mxu2  ;;  %v925_v36 = vpop.f32.mrf.mxu3 }
 0x20d   : > { %1191 = vst [vmem:[%s2019_s19 + $0x160] sm:$0xff] %v999_v33  ;;  %v926_v37 = vadd.f32 %v925_v36, %v812_v34  ;;  %v369_v36 = vld [vmem:[#allocation2 + $0xc0] sm:$0xff] }
 0x20f   : > { %v1000_v38 = vadd.f32 %v926_v37, %v356_v35  ;;  %v589_v39 = vpop.f32.mrf.mxu0  ;;  %v702_v41 = vpop.f32.mrf.mxu1 }
 0x210   : > { %v703_v42 = vadd.f32 %v702_v41, %v589_v39  ;;  %v370_v41 = vld [vmem:[#allocation2 + $0x1c0] sm:$0xff] }
 0x211   : > { %1064 = vst [vmem:[#allocation2 + $0x90] sm:$0xff] %v1000_v38 }
 0x212   : > { %1192 = vst [vmem:[%s2019_s19 + $0x168] sm:$0xff] %v1000_v38  ;;  %v1001_v43 = vadd.f32 %v703_v42, %v357_v40 }
 0x214   : > { %1065 = vst [vmem:[#allocation2 + $0x1d8] sm:$0xff] %v1001_v43  ;;  %v815_v44 = vpop.f32.mrf.mxu2  ;;  %v928_v46 = vpop.f32.mrf.mxu3 }
 0x215   : > { %1193 = vst [vmem:[%s2019_s19 + $0x170] sm:$0xff] %v1001_v43  ;;  %v929_v47 = vadd.f32 %v928_v46, %v815_v44  ;;  %v371_v46 = vld [vmem:[#allocation2 + $0x158] sm:$0xff] }
 0x217   : > { %v1002_v48 = vadd.f32 %v929_v47, %v358_v45  ;;  %v592_v49 = vpop.f32.mrf.mxu0  ;;  %v705_v51 = vpop.f32.mrf.mxu1 }
 0x218   : > { %v706_v52 = vadd.f32 %v705_v51, %v592_v49  ;;  %v372_v51 = vld [vmem:[#allocation2 + $0x10] sm:$0xff] }
 0x219   : > { %1066 = vst [vmem:[#allocation2 + $0xd0] sm:$0xff] %v1002_v48 }
 0x21a   : > { %1194 = vst [vmem:[%s2019_s19 + $0x178] sm:$0xff] %v1002_v48  ;;  %v1003_v53 = vadd.f32 %v706_v52, %v359_v50 }
 0x21c   : > { %1067 = vst [vmem:[#allocation2 + $0xb8] sm:$0xff] %v1003_v53  ;;  %v818_v54 = vpop.f32.mrf.mxu2  ;;  %v931_v56 = vpop.f32.mrf.mxu3 }
 0x21d   : > { %1195 = vst [vmem:[%s2019_s19 + $0x180] sm:$0xff] %v1003_v53  ;;  %v932_v57 = vadd.f32 %v931_v56, %v818_v54  ;;  %v373_v56 = vld [vmem:[#allocation2 + $0x58] sm:$0xff] }
 0x21f   : > { %v1004_v58 = vadd.f32 %v932_v57, %v360_v55  ;;  %v595_v59 = vpop.f32.mrf.mxu0  ;;  %v708_v61 = vpop.f32.mrf.mxu1 }
 0x220   : > { %v709_v62 = vadd.f32 %v708_v61, %v595_v59  ;;  %v374_v61 = vld [vmem:[#allocation2 + $0xa0] sm:$0xff] }
 0x221   : > { %1068 = vst [vmem:[#allocation2 + $0x88] sm:$0xff] %v1004_v58 }
 0x222   : > { %1196 = vst [vmem:[%s2019_s19 + $0x188] sm:$0xff] %v1004_v58  ;;  %v1005_v63 = vadd.f32 %v709_v62, %v361_v60 }
 0x224   : > { %1069 = vst [vmem:[#allocation2 + $0xa8] sm:$0xff] %v1005_v63  ;;  %v821_v0 = vpop.f32.mrf.mxu2  ;;  %v934_v2 = vpop.f32.mrf.mxu3 }
 0x225   : > { %1197 = vst [vmem:[%s2019_s19 + $0x190] sm:$0xff] %v1005_v63  ;;  %v935_v3 = vadd.f32 %v934_v2, %v821_v0 }
 0x227   : > { %v1006_v4 = vadd.f32 %v935_v3, %v362_v1  ;;  %v598_v5 = vpop.f32.mrf.mxu0  ;;  %v711_v7 = vpop.f32.mrf.mxu1 }
 0x228   : > { %v712_v8 = vadd.f32 %v711_v7, %v598_v5 }
 0x229   : > { %1070 = vst [vmem:[#allocation2 + $0x1c8] sm:$0xff] %v1006_v4 }
 0x22a   : > { %1198 = vst [vmem:[%s2019_s19 + $0x198] sm:$0xff] %v1006_v4  ;;  %v1007_v9 = vadd.f32 %v712_v8, %v363_v6 }
 0x22c   : > { %1071 = vst [vmem:[#allocation2 + $0x170] sm:$0xff] %v1007_v9  ;;  %v824_v10 = vpop.f32.mrf.mxu2  ;;  %v937_v12 = vpop.f32.mrf.mxu3 }
 0x22d   : > { %1199 = vst [vmem:[%s2019_s19 + $0x1a0] sm:$0xff] %v1007_v9  ;;  %v938_v13 = vadd.f32 %v937_v12, %v824_v10 }
 0x22f   : > { %v1008_v14 = vadd.f32 %v938_v13, %v364_v11  ;;  %v601_v15 = vpop.f32.mrf.mxu0  ;;  %v714_v17 = vpop.f32.mrf.mxu1 }
 0x230   : > { %v715_v18 = vadd.f32 %v714_v17, %v601_v15 }
 0x231   : > { %1072 = vst [vmem:[#allocation2 + $0x178] sm:$0xff] %v1008_v14 }
 0x232   : > { %1200 = vst [vmem:[%s2019_s19 + $0x1a8] sm:$0xff] %v1008_v14  ;;  %v1009_v19 = vadd.f32 %v715_v18, %v365_v16 }
 0x234   : > { %1073 = vst [vmem:[#allocation2 + $0x68] sm:$0xff] %v1009_v19  ;;  %v827_v20 = vpop.f32.mrf.mxu2  ;;  %v940_v22 = vpop.f32.mrf.mxu3 }
 0x235   : > { %1201 = vst [vmem:[%s2019_s19 + $0x1b0] sm:$0xff] %v1009_v19  ;;  %v941_v23 = vadd.f32 %v940_v22, %v827_v20 }
 0x237   : > { %v1010_v24 = vadd.f32 %v941_v23, %v366_v21  ;;  %v604_v25 = vpop.f32.mrf.mxu0  ;;  %v717_v27 = vpop.f32.mrf.mxu1 }
 0x238   : > { %v718_v28 = vadd.f32 %v717_v27, %v604_v25 }
 0x239   : > { %1074 = vst [vmem:[#allocation2 + $0x190] sm:$0xff] %v1010_v24 }
 0x23a   : > { %1202 = vst [vmem:[%s2019_s19 + $0x1b8] sm:$0xff] %v1010_v24  ;;  %v1011_v29 = vadd.f32 %v718_v28, %v367_v26 }
 0x23c   : > { %1075 = vst [vmem:[#allocation2 + $0x198] sm:$0xff] %v1011_v29  ;;  %v830_v30 = vpop.f32.mrf.mxu2  ;;  %v943_v32 = vpop.f32.mrf.mxu3 }
 0x23d   : > { %1203 = vst [vmem:[%s2019_s19 + $0x1c0] sm:$0xff] %v1011_v29  ;;  %v944_v33 = vadd.f32 %v943_v32, %v830_v30 }
 0x23f   : > { %v1012_v34 = vadd.f32 %v944_v33, %v368_v31  ;;  %v607_v35 = vpop.f32.mrf.mxu0  ;;  %v720_v37 = vpop.f32.mrf.mxu1 }
 0x240   : > { %v721_v38 = vadd.f32 %v720_v37, %v607_v35 }
 0x241   : > { %1076 = vst [vmem:[#allocation2 + $0x38] sm:$0xff] %v1012_v34 }
 0x242   : > { %1204 = vst [vmem:[%s2019_s19 + $0x1c8] sm:$0xff] %v1012_v34  ;;  %v1013_v39 = vadd.f32 %v721_v38, %v369_v36 }
 0x244   : > { %1077 = vst [vmem:[#allocation2 + $0xc0] sm:$0xff] %v1013_v39  ;;  %v833_v40 = vpop.f32.mrf.mxu2  ;;  %v946_v42 = vpop.f32.mrf.mxu3 }
 0x245   : > { %1205 = vst [vmem:[%s2019_s19 + $0x1d0] sm:$0xff] %v1013_v39  ;;  %v947_v43 = vadd.f32 %v946_v42, %v833_v40 }
 0x247   : > { %v1014_v44 = vadd.f32 %v947_v43, %v370_v41  ;;  %v610_v45 = vpop.f32.mrf.mxu0  ;;  %v723_v47 = vpop.f32.mrf.mxu1 }
 0x248   : > { %v724_v48 = vadd.f32 %v723_v47, %v610_v45 }
 0x249   : > { %1078 = vst [vmem:[#allocation2 + $0x1c0] sm:$0xff] %v1014_v44 }
 0x24a   : > { %1206 = vst [vmem:[%s2019_s19 + $0x1d8] sm:$0xff] %v1014_v44  ;;  %v1015_v49 = vadd.f32 %v724_v48, %v371_v46 }
 0x24c   : > { %1079 = vst [vmem:[#allocation2 + $0x158] sm:$0xff] %v1015_v49  ;;  %v836_v50 = vpop.f32.mrf.mxu2  ;;  %v949_v52 = vpop.f32.mrf.mxu3 }
 0x24d   : > { %1207 = vst [vmem:[%s2019_s19 + $0x1e0] sm:$0xff] %v1015_v49  ;;  %v950_v53 = vadd.f32 %v949_v52, %v836_v50 }
 0x24f   : > { %v1016_v54 = vadd.f32 %v950_v53, %v372_v51  ;;  %v613_v55 = vpop.f32.mrf.mxu0  ;;  %v726_v57 = vpop.f32.mrf.mxu1 }
 0x250   : > { %v727_v58 = vadd.f32 %v726_v57, %v613_v55 }
 0x251   : > { %1080 = vst [vmem:[#allocation2 + $0x10] sm:$0xff] %v1016_v54 }
 0x252   : > { %1208 = vst [vmem:[%s2019_s19 + $0x1e8] sm:$0xff] %v1016_v54  ;;  %v1017_v59 = vadd.f32 %v727_v58, %v373_v56 }
 0x254   : > { %1081 = vst [vmem:[#allocation2 + $0x58] sm:$0xff] %v1017_v59  ;;  %v839_v60 = vpop.f32.mrf.mxu2  ;;  %v952_v62 = vpop.f32.mrf.mxu3 }
 0x255   : > { %1209 = vst [vmem:[%s2019_s19 + $0x1f0] sm:$0xff] %v1017_v59  ;;  %v953_v63 = vadd.f32 %v952_v62, %v839_v60 }
 0x257   : > { %v1018_v0 = vadd.f32 %v953_v63, %v374_v61 }
 0x259   : > { %1082 = vst [vmem:[#allocation2 + $0xa0] sm:$0xff] %v1018_v0 }
 0x25a   : > { %1210 = vst [vmem:[%s2019_s19 + $0x1f8] sm:$0xff] %v1018_v0 }
 0x25b   : > { %1622 = shalt.err (!%p1619_p4)
}
 0x25c   : > { %s1767_s17 = smov 256   ;;  %s1768_s19 = smov 1536  }
 0x25d   : > { %s1769_s3 = smov 16  }
 0x25e   : > { %1385 = dma.vmem_to_hbm [thread:$0]  (%p1967_p11), %s1228_s27, 8192, %s1230_s29, %s1212_s26, %s1767_s17, %s1768_s19, %s1769_s3  }
 0x25f PF: > { %p1399_p13 = scmp.ge.s32.totalorder %s1761_s24, 2  ;;  %s1244_s15 = sand.u32 1, %s1701_s9  }
 0x260   : > { %s1245_s18 = scalar_lea.sflag [#allocation5], %s1244_s15 }
 0x261   : > { %p1395_p1 = pnand %p1399_p13, %p1982_p2 }
 0x263   : > { %p1396_p3 = pneg %p1395_p1 }
 0x265   : > { %1696 = dma.done.wait (%p1396_p3), %s1245_s18, 8192  }
 0x266   : > { %1698 = vsyncadd (%p1396_p3), %s1245_s18, 4294959104  ;;  %s21_s24 = sadd.s32 1, %s1761_s24   ;;  %s2405_s4 = sld [smem:[#allocation23_spill]] }
 0x267   : > { %p2301_p6 = scmp.ge.s32.totalorder %s21_s24, 26   ;;  %s2406_s7 = sld [smem:[#allocation12_spill]] }
 0x268   : > { %s2407_s14 = sld [smem:[#allocation21_spill]]  ;;  %s2414_s9 = smov %s1705_s10 }
 0x269   : > { %s2408_s23 = sld [smem:[#allocation13_spill]]  ;;  %s2416_s10 = smov %s1709_s11 }
 0x26a   : > { %s2409_s17 = sld [smem:[#allocation22_spill]]  ;;  %s2418_s12 = smov %s1717_s13 }
 0x26b   : > { %s2410_s20 = sld [smem:[#allocation17_spill]]  ;;  %s2420_s15 = smov %s1729_s16 }
 0x26c   : > { %s2411_s30 = sld [smem:[#allocation18_spill]]  ;;  %s2417_s11 = smov %s2405_s4 }
 0x26d   : > { %s2412_s27 = sld [smem:[#allocation19_spill]]  ;;  %s2419_s13 = smov %s2406_s7 }
 0x26e   : > { %s2413_s29 = sld [smem:[#allocation20_spill]]  ;;  %s2422_s18 = smov %s1749_s21 }
 0x26f   : > { %s2421_s16 = smov %s2408_s23  ;;  %s2423_s19 = smov %s1753_s22 }
 0x270   :  { %20 = sbr.rel (!%p2301_p6) target bundleno = 16 (0x10), region = 90 }
 0x272   : > { %s2424_s21 = smov %s2411_s30 }
 0x273   : > { %s2425_s22 = smov %s2412_s27 }
 0x274   : > { %s2426_s23 = smov %s2413_s29 }
 0x275   :  { %1251 = vsyncpa [#allocation4], 1 }
 0x276   :  { %1253 = vsyncpa [#allocation4 + $0x1], 1 }
 0x277   :  { %1254 = vsyncpa [#allocation7], 1 }
 0x278   :  { %1256 = vsyncpa [#allocation7 + $0x1], 1 }
 0x279   :  { %1257 = vsyncpa [#allocation5], 1 }
 0x27a   :  { %1259 = vsyncpa [#allocation5 + $0x1], 1 }

</bundles_post_ra>
